<compile_context>
chip_gen: v7x
topology: tpu7x:2x2x1
jax: 0.10.0
libtpu: 0.0.40
codegen_flags: <defaults>
</compile_context>

<pallas_src>
import functools

import jax
import jax.numpy as jnp
from jax.experimental import pallas as pl
from jax.experimental.pallas import tpu as pltpu

NEG_INF = -9e15


def _elu(x):
    # exp(min(x,0)) - 1 (not expm1) for guaranteed Mosaic lowering; minor
    # precision loss for tiny negative activations only.
    return jnp.where(x > 0.0, x, jnp.exp(jnp.minimum(x, 0.0)) - 1.0)


def fused_gat_kernel(x_ref, bias_ref, w1_ref, a1s_ref, a1d_ref,
                     w2_ref, a2s_ref, a2d_ref, out_ref, *, alpha):
    """Full 2-layer dense-GAT forward for one graph (one grid step), all in VMEM."""
    nheads, nhid = a1s_ref.shape
    n = x_ref.shape[1]
    outp = w2_ref.shape[1]                         # 128-lane padded output width

    x = x_ref[0]                                   # (N, Fin)  f32
    adj_bias = bias_ref[0]                         # (N, N)    f32 additive mask
    x_bf = x.astype(jnp.bfloat16)

    def attend(wh, a_src, a_dst):
        # wh: (N, F) f32; a_src / a_dst: (1, F) f32.
        # src logits: VPU multiply + lane reduce -> (N, 1)
        src = jnp.sum(wh * a_src, axis=-1, keepdims=True)
        # dst logits lane-major directly (trans-b contraction on the MXU),
        # avoiding a sublane->lane transpose per softmax.
        dst = jax.lax.dot_general(
            a_dst, wh, dimension_numbers=(((1,), (1,)), ((), ())),
            preferred_element_type=jnp.float32)              # (1, N)
        e = src + dst                                        # (N, N)
        e = jnp.maximum(e, alpha * e) + adj_bias             # LeakyReLU + mask
        m = jnp.max(e, axis=-1, keepdims=True)
        p = jnp.exp(e - m)
        denom = jnp.sum(p, axis=-1, keepdims=True)
        attn = p * pl.reciprocal(denom, approx=True)         # EUP vrcp
        return jnp.dot(attn.astype(jnp.bfloat16), wh.astype(jnp.bfloat16),
                       preferred_element_type=jnp.float32)

    # ---- layer 1 heads + per-head accumulation into layer-2 pre-activation ----
    acc2 = jnp.zeros((n, outp), jnp.float32)
    for h in range(nheads):                                  # trace-time unroll
        w1h = w1_ref[h].astype(jnp.bfloat16)                 # (Fin, nhid) leading-axis slice
        wh = jnp.dot(x_bf, w1h, preferred_element_type=jnp.float32)
        hh = _elu(attend(wh, a1s_ref[h:h + 1, :], a1d_ref[h:h + 1, :]))
        # Replaces concat(dim=1) + one big matmul; W2 row-block slices are
        # sublane aligned (nhid is a multiple of 8).
        w2h = w2_ref[h * nhid:(h + 1) * nhid, :].astype(jnp.bfloat16)
        acc2 = acc2 + jnp.dot(hh.astype(jnp.bfloat16), w2h,
                              preferred_element_type=jnp.float32)

    # ---- layer 2 (out_att, concat=False) + module-level F.elu ----
    h2 = attend(acc2, a2s_ref[...], a2d_ref[...])
    out_ref[0] = _elu(h2)                                    # (N, outp) lane-dense store


def gat_regression_forward(params, x, adj, *, alpha=0.2):
    """Module forward (eval mode: dropout == identity).
    x: (B, N, Fin) or (N, Fin); adj: matching (B, N, N) or (N, N)."""
    squeeze = x.ndim == 2
    if squeeze:
        x, adj = x[None], adj[None]
    B, N, Fin = x.shape
    H, _, nhid = params["W1"].shape
    outd_2 = params["W2"].shape[1]
    OUTP = 128 * pl.cdiv(outd_2, 128)            # lane-dense padded output width

    # Hoisted out of the kernel: additive adjacency bias shared by every head.
    adj_bias = jnp.where(adj > 0, 0.0, NEG_INF).astype(jnp.float32)

    # Zero-pad out_att parameters to the lane-dense width (padded columns stay
    # exactly zero through both matmuls + ELU; sliced off below).
    w2p = jnp.zeros((H * nhid, OUTP), jnp.float32).at[:, :outd_2].set(params["W2"])
    a2s = jnp.zeros((1, OUTP), jnp.float32).at[:, :outd_2].set(params["a2_src"])
    a2d = jnp.zeros((1, OUTP), jnp.float32).at[:, :outd_2].set(params["a2_dst"])

    out = pl.pallas_call(
        functools.partial(fused_gat_kernel, alpha=alpha),
        out_shape=jax.ShapeDtypeStruct((B, N, OUTP), jnp.float32),
        grid_spec=pltpu.PrefetchScalarGridSpec(
            num_scalar_prefetch=0,
            grid=(B,),
            in_specs=[
                pl.BlockSpec((1, N, Fin), lambda b: (b, 0, 0)),      # x[b]
                pl.BlockSpec((1, N, N), lambda b: (b, 0, 0)),        # adj_bias[b]
                pl.BlockSpec((H, Fin, nhid), lambda b: (0, 0, 0)),   # W1 (resident)
                pl.BlockSpec((H, nhid), lambda b: (0, 0)),           # a1_src
                pl.BlockSpec((H, nhid), lambda b: (0, 0)),           # a1_dst
                pl.BlockSpec((H * nhid, OUTP), lambda b: (0, 0)),    # W2 (padded)
                pl.BlockSpec((1, OUTP), lambda b: (0, 0)),           # a2_src
                pl.BlockSpec((1, OUTP), lambda b: (0, 0)),           # a2_dst
            ],
            out_specs=pl.BlockSpec((1, N, OUTP), lambda b: (b, 0, 0)),
        ),
        compiler_params=pltpu.CompilerParams(
            dimension_semantics=("parallel",)),   # shards graphs across TCs on v7x
    )(x, adj_bias, params["W1"], params["a1_src"], params["a1_dst"],
      w2p, a2s, a2d)

    out = out[:, :, :outd_2]
    return out[0] if squeeze else out


def init_params(key, nfeat, nhid, outd_2, nheads):
    ks = jax.random.split(key, 6)
    s = lambda fan_in: 1.0 / jnp.sqrt(jnp.float32(fan_in))
    return {
        "W1": jax.random.normal(ks[0], (nheads, nfeat, nhid), jnp.float32) * s(nfeat),
        "a1_src": jax.random.normal(ks[1], (nheads, nhid), jnp.float32) * s(nhid),
        "a1_dst": jax.random.normal(ks[2], (nheads, nhid), jnp.float32) * s(nhid),
        "W2": jax.random.normal(ks[3], (nheads * nhid, outd_2), jnp.float32) * s(nheads * nhid),
        "a2_src": jax.random.normal(ks[4], (1, outd_2), jnp.float32) * s(outd_2),
        "a2_dst": jax.random.normal(ks[5], (1, outd_2), jnp.float32) * s(outd_2),
    }


def _reference_forward(params, x, adj, *, alpha=0.2):
    """Pure-JAX reference for one graph.  Mirrors the kernel's numerics
    (bf16 operands at matmul boundaries, f32 accumulation/elementwise)."""
    nheads, _, nhid = params["W1"].shape
    bf = lambda t: t.astype(jnp.bfloat16).astype(jnp.float32)

    def layer(h, W, a_src, a_dst):
        wh = bf(h) @ bf(W)
        e = (wh * a_src).sum(-1, keepdims=True) + (wh * a_dst).sum(-1, keepdims=True).T
        e = jnp.where(e > 0, e, alpha * e)
        e = jnp.where(adj > 0, e, NEG_INF)
        attn = jax.nn.softmax(e, axis=1)
        return bf(attn) @ bf(wh)

    heads = [_elu(layer(x, params["W1"][h], params["a1_src"][h], params["a1_dst"][h]))
             for h in range(nheads)]
    h1 = jnp.concatenate(heads, axis=1)
    h2 = layer(h1, params["W2"], params["a2_src"][0], params["a2_dst"][0])
    return _elu(h2)


if __name__ == "__main__":
    # Small shapes consistent with the module's forward; B graphs batched per call.
    B, N, nfeat, nhid, outd_2, nheads = 8, 64, 32, 16, 8, 4
    alpha = 0.2

    key = jax.random.PRNGKey(0)
    kx, kadj, kp = jax.random.split(key, 3)

    x = jax.random.normal(kx, (B, N, nfeat), jnp.float32)
    # Random sparse-ish symmetric adjacency with self loops (precondition: every
    # node has at least one unmasked neighbour).
    a = (jax.random.uniform(kadj, (B, N, N)) < 0.1).astype(jnp.float32)
    adj = jnp.clip(a + jnp.swapaxes(a, -1, -2) + jnp.eye(N, dtype=jnp.float32)[None],
                   0.0, 1.0)

    params = init_params(kp, nfeat, nhid, outd_2, nheads)

    out = gat_regression_forward(params, x, adj, alpha=alpha)
    out = jax.block_until_ready(out)
    assert out.shape == (B, N, outd_2)

    ref = jax.vmap(lambda xg, ag: _reference_forward(params, xg, ag, alpha=alpha))(x, adj)
    # Tolerance bounded by the approximate EUP reciprocal in the softmax.
    max_err = float(jnp.max(jnp.abs(out - ref)))
    assert jnp.allclose(out, ref, atol=5e-3, rtol=5e-3), f"max abs err {max_err}"

    print("KERNEL_OK")
</pallas_src>

<mosaic_0001>
module attributes {stable_mosaic.version = 11 : i64} {
  func.func @fused_gat_kernel(%arg0: i32, %arg1: memref<1x64x32xf32, #tpu.memory_space<vmem>>, %arg2: memref<1x64x64xf32, #tpu.memory_space<vmem>>, %arg3: memref<4x32x16xf32, #tpu.memory_space<vmem>>, %arg4: memref<4x16xf32, #tpu.memory_space<vmem>>, %arg5: memref<4x16xf32, #tpu.memory_space<vmem>>, %arg6: memref<64x128xf32, #tpu.memory_space<vmem>>, %arg7: memref<1x128xf32, #tpu.memory_space<vmem>>, %arg8: memref<1x128xf32, #tpu.memory_space<vmem>>, %arg9: memref<1x64x128xf32, #tpu.memory_space<vmem>>) attributes {dimension_semantics = [#tpu.dimension_semantics<parallel>], iteration_bounds = array<i64: 8>, scalar_prefetch = 0 : i64, scratch_operands = 0 : i64, tpu.core_type = #tpu.core_type<tc>, window_params = [{transform_indices = @transform_0, window_bounds = array<i64: 1, 64, 32>}, {transform_indices = @transform_1, window_bounds = array<i64: 1, 64, 64>}, {pipeline_mode = #tpu.pipeline_mode<synchronous>, transform_indices = @transform_2, window_bounds = array<i64: 4, 32, 16>}, {pipeline_mode = #tpu.pipeline_mode<synchronous>, transform_indices = @transform_3, window_bounds = array<i64: 4, 16>}, {pipeline_mode = #tpu.pipeline_mode<synchronous>, transform_indices = @transform_4, window_bounds = array<i64: 4, 16>}, {pipeline_mode = #tpu.pipeline_mode<synchronous>, transform_indices = @transform_5, window_bounds = array<i64: 64, 128>}, {pipeline_mode = #tpu.pipeline_mode<synchronous>, transform_indices = @transform_6, window_bounds = array<i64: 1, 128>}, {pipeline_mode = #tpu.pipeline_mode<synchronous>, transform_indices = @transform_7, window_bounds = array<i64: 1, 128>}, {transform_indices = @transform_8, window_bounds = array<i64: 1, 64, 128>}]} {
    %c0 = arith.constant 0 : index
    %c0_0 = arith.constant 0 : index
    %c0_1 = arith.constant 0 : index
    %0 = vector.load %arg1[%c0, %c0_0, %c0_1] : memref<1x64x32xf32, #tpu.memory_space<vmem>>, vector<1x64x32xf32>
    %1 = vector.shape_cast %0 : vector<1x64x32xf32> to vector<64x32xf32>
    %c0_2 = arith.constant 0 : index
    %c0_3 = arith.constant 0 : index
    %c0_4 = arith.constant 0 : index
    %2 = vector.load %arg2[%c0_2, %c0_3, %c0_4] : memref<1x64x64xf32, #tpu.memory_space<vmem>>, vector<1x64x64xf32>
    %3 = vector.shape_cast %2 : vector<1x64x64xf32> to vector<64x64xf32>
    %4 = arith.truncf %1 : vector<64x32xf32> to vector<64x32xbf16>
    %cst = arith.constant 0.000000e+00 : f32
    %5 = vector.broadcast %cst : f32 to vector<64x128xf32>
    %c0_5 = arith.constant 0 : index
    %c0_6 = arith.constant 0 : index
    %c0_7 = arith.constant 0 : index
    %6 = vector.load %arg3[%c0_5, %c0_6, %c0_7] : memref<4x32x16xf32, #tpu.memory_space<vmem>>, vector<1x32x16xf32>
    %7 = vector.shape_cast %6 : vector<1x32x16xf32> to vector<32x16xf32>
    %8 = arith.truncf %7 : vector<32x16xf32> to vector<32x16xbf16>
    %cst_8 = arith.constant dense<0.000000e+00> : vector<64x16xf32>
    %9 = tpu.matmul %4, %8, %cst_8 {dimension_numbers = #tpu.dot_dimension_numbers<[1], [0], [0], [1], [0, 0, 1, 1], [], []>} : vector<64x32xbf16>, vector<32x16xbf16>, vector<64x16xf32> -> vector<64x16xf32>
    %c0_9 = arith.constant 0 : index
    %c0_10 = arith.constant 0 : index
    %10 = vector.load %arg4[%c0_9, %c0_10] : memref<4x16xf32, #tpu.memory_space<vmem>>, vector<1x16xf32>
    %c0_11 = arith.constant 0 : index
    %c0_12 = arith.constant 0 : index
    %11 = vector.load %arg5[%c0_11, %c0_12] : memref<4x16xf32, #tpu.memory_space<vmem>>, vector<1x16xf32>
    %12 = vector.broadcast %10 : vector<1x16xf32> to vector<64x16xf32>
    %13 = arith.mulf %9, %12 : vector<64x16xf32>
    %cst_13 = arith.constant dense<0.000000e+00> : vector<64xf32>
    %14 = vector.multi_reduction <add>, %13, %cst_13 [1] : vector<64x16xf32> to vector<64xf32>
    %15 = vector.shape_cast %14 : vector<64xf32> to vector<64x1xf32>
    %cst_14 = arith.constant dense<0.000000e+00> : vector<1x64xf32>
    %16 = tpu.matmul %11, %9, %cst_14 {dimension_numbers = #tpu.dot_dimension_numbers<[1], [1], [0], [0], [0, 0, 1, 0], [], []>} : vector<1x16xf32>, vector<64x16xf32>, vector<1x64xf32> -> vector<1x64xf32>
    %17 = vector.broadcast %15 : vector<64x1xf32> to vector<64x64xf32>
    %18 = vector.broadcast %16 : vector<1x64xf32> to vector<64x64xf32>
    %19 = arith.addf %17, %18 : vector<64x64xf32>
    %cst_15 = arith.constant 2.000000e-01 : f32
    %20 = vector.broadcast %cst_15 : f32 to vector<64x64xf32>
    %21 = arith.mulf %20, %19 : vector<64x64xf32>
    %22 = arith.maximumf %19, %21 : vector<64x64xf32>
    %23 = arith.addf %22, %3 : vector<64x64xf32>
    %cst_16 = arith.constant dense<0xFF800000> : vector<64xf32>
    %24 = vector.multi_reduction <maximumf>, %23, %cst_16 [1] : vector<64x64xf32> to vector<64xf32>
    %25 = vector.shape_cast %24 : vector<64xf32> to vector<64x1xf32>
    %26 = vector.broadcast %25 : vector<64x1xf32> to vector<64x64xf32>
    %27 = arith.subf %23, %26 : vector<64x64xf32>
    %28 = math.exp %27 : vector<64x64xf32>
    %cst_17 = arith.constant dense<0.000000e+00> : vector<64xf32>
    %29 = vector.multi_reduction <add>, %28, %cst_17 [1] : vector<64x64xf32> to vector<64xf32>
    %30 = vector.shape_cast %29 : vector<64xf32> to vector<64x1xf32>
    %31 = tpu.reciprocal %30 {approx = true} : vector<64x1xf32> -> vector<64x1xf32>
    %32 = vector.broadcast %31 : vector<64x1xf32> to vector<64x64xf32>
    %33 = arith.mulf %28, %32 : vector<64x64xf32>
    %34 = arith.truncf %33 : vector<64x64xf32> to vector<64x64xbf16>
    %35 = arith.truncf %9 : vector<64x16xf32> to vector<64x16xbf16>
    %cst_18 = arith.constant dense<0.000000e+00> : vector<64x16xf32>
    %36 = tpu.matmul %34, %35, %cst_18 {dimension_numbers = #tpu.dot_dimension_numbers<[1], [0], [0], [1], [0, 0, 1, 1], [], []>} : vector<64x64xbf16>, vector<64x16xbf16>, vector<64x16xf32> -> vector<64x16xf32>
    %cst_19 = arith.constant 0.000000e+00 : f32
    %37 = vector.broadcast %cst_19 : f32 to vector<64x16xf32>
    %38 = arith.cmpf ogt, %36, %37 : vector<64x16xf32>
    %cst_20 = arith.constant 0.000000e+00 : f32
    %39 = vector.broadcast %cst_20 : f32 to vector<64x16xf32>
    %40 = arith.minimumf %36, %39 : vector<64x16xf32>
    %41 = math.exp %40 : vector<64x16xf32>
    %cst_21 = arith.constant 1.000000e+00 : f32
    %42 = vector.broadcast %cst_21 : f32 to vector<64x16xf32>
    %43 = arith.subf %41, %42 : vector<64x16xf32>
    %44 = arith.select %38, %36, %43 : vector<64x16xi1>, vector<64x16xf32>
    %c0_22 = arith.constant 0 : index
    %c0_23 = arith.constant 0 : index
    %45 = vector.load %arg6[%c0_22, %c0_23] : memref<64x128xf32, #tpu.memory_space<vmem>>, vector<16x128xf32>
    %46 = arith.truncf %45 : vector<16x128xf32> to vector<16x128xbf16>
    %47 = arith.truncf %44 : vector<64x16xf32> to vector<64x16xbf16>
    %cst_24 = arith.constant dense<0.000000e+00> : vector<64x128xf32>
    %48 = tpu.matmul %47, %46, %cst_24 {dimension_numbers = #tpu.dot_dimension_numbers<[1], [0], [0], [1], [0, 0, 1, 1], [], []>} : vector<64x16xbf16>, vector<16x128xbf16>, vector<64x128xf32> -> vector<64x128xf32>
    %49 = arith.addf %5, %48 : vector<64x128xf32>
    %c1 = arith.constant 1 : index
    %c0_25 = arith.constant 0 : index
    %c0_26 = arith.constant 0 : index
    %50 = vector.load %arg3[%c1, %c0_25, %c0_26] : memref<4x32x16xf32, #tpu.memory_space<vmem>>, vector<1x32x16xf32>
    %51 = vector.shape_cast %50 : vector<1x32x16xf32> to vector<32x16xf32>
    %52 = arith.truncf %51 : vector<32x16xf32> to vector<32x16xbf16>
    %cst_27 = arith.constant dense<0.000000e+00> : vector<64x16xf32>
    %53 = tpu.matmul %4, %52, %cst_27 {dimension_numbers = #tpu.dot_dimension_numbers<[1], [0], [0], [1], [0, 0, 1, 1], [], []>} : vector<64x32xbf16>, vector<32x16xbf16>, vector<64x16xf32> -> vector<64x16xf32>
    %c1_28 = arith.constant 1 : index
    %c0_29 = arith.constant 0 : index
    %54 = vector.load %arg4[%c1_28, %c0_29] : memref<4x16xf32, #tpu.memory_space<vmem>>, vector<1x16xf32>
    %c1_30 = arith.constant 1 : index
    %c0_31 = arith.constant 0 : index
    %55 = vector.load %arg5[%c1_30, %c0_31] : memref<4x16xf32, #tpu.memory_space<vmem>>, vector<1x16xf32>
    %56 = vector.broadcast %54 : vector<1x16xf32> to vector<64x16xf32>
    %57 = arith.mulf %53, %56 : vector<64x16xf32>
    %cst_32 = arith.constant dense<0.000000e+00> : vector<64xf32>
    %58 = vector.multi_reduction <add>, %57, %cst_32 [1] : vector<64x16xf32> to vector<64xf32>
    %59 = vector.shape_cast %58 : vector<64xf32> to vector<64x1xf32>
    %cst_33 = arith.constant dense<0.000000e+00> : vector<1x64xf32>
    %60 = tpu.matmul %55, %53, %cst_33 {dimension_numbers = #tpu.dot_dimension_numbers<[1], [1], [0], [0], [0, 0, 1, 0], [], []>} : vector<1x16xf32>, vector<64x16xf32>, vector<1x64xf32> -> vector<1x64xf32>
    %61 = vector.broadcast %59 : vector<64x1xf32> to vector<64x64xf32>
    %62 = vector.broadcast %60 : vector<1x64xf32> to vector<64x64xf32>
    %63 = arith.addf %61, %62 : vector<64x64xf32>
    %cst_34 = arith.constant 2.000000e-01 : f32
    %64 = vector.broadcast %cst_34 : f32 to vector<64x64xf32>
    %65 = arith.mulf %64, %63 : vector<64x64xf32>
    %66 = arith.maximumf %63, %65 : vector<64x64xf32>
    %67 = arith.addf %66, %3 : vector<64x64xf32>
    %cst_35 = arith.constant dense<0xFF800000> : vector<64xf32>
    %68 = vector.multi_reduction <maximumf>, %67, %cst_35 [1] : vector<64x64xf32> to vector<64xf32>
    %69 = vector.shape_cast %68 : vector<64xf32> to vector<64x1xf32>
    %70 = vector.broadcast %69 : vector<64x1xf32> to vector<64x64xf32>
    %71 = arith.subf %67, %70 : vector<64x64xf32>
    %72 = math.exp %71 : vector<64x64xf32>
    %cst_36 = arith.constant dense<0.000000e+00> : vector<64xf32>
    %73 = vector.multi_reduction <add>, %72, %cst_36 [1] : vector<64x64xf32> to vector<64xf32>
    %74 = vector.shape_cast %73 : vector<64xf32> to vector<64x1xf32>
    %75 = tpu.reciprocal %74 {approx = true} : vector<64x1xf32> -> vector<64x1xf32>
    %76 = vector.broadcast %75 : vector<64x1xf32> to vector<64x64xf32>
    %77 = arith.mulf %72, %76 : vector<64x64xf32>
    %78 = arith.truncf %77 : vector<64x64xf32> to vector<64x64xbf16>
    %79 = arith.truncf %53 : vector<64x16xf32> to vector<64x16xbf16>
    %cst_37 = arith.constant dense<0.000000e+00> : vector<64x16xf32>
    %80 = tpu.matmul %78, %79, %cst_37 {dimension_numbers = #tpu.dot_dimension_numbers<[1], [0], [0], [1], [0, 0, 1, 1], [], []>} : vector<64x64xbf16>, vector<64x16xbf16>, vector<64x16xf32> -> vector<64x16xf32>
    %cst_38 = arith.constant 0.000000e+00 : f32
    %81 = vector.broadcast %cst_38 : f32 to vector<64x16xf32>
    %82 = arith.cmpf ogt, %80, %81 : vector<64x16xf32>
    %cst_39 = arith.constant 0.000000e+00 : f32
    %83 = vector.broadcast %cst_39 : f32 to vector<64x16xf32>
    %84 = arith.minimumf %80, %83 : vector<64x16xf32>
    %85 = math.exp %84 : vector<64x16xf32>
    %cst_40 = arith.constant 1.000000e+00 : f32
    %86 = vector.broadcast %cst_40 : f32 to vector<64x16xf32>
    %87 = arith.subf %85, %86 : vector<64x16xf32>
    %88 = arith.select %82, %80, %87 : vector<64x16xi1>, vector<64x16xf32>
    %c16 = arith.constant 16 : index
    %c0_41 = arith.constant 0 : index
    %89 = vector.load %arg6[%c16, %c0_41] : memref<64x128xf32, #tpu.memory_space<vmem>>, vector<16x128xf32>
    %90 = arith.truncf %89 : vector<16x128xf32> to vector<16x128xbf16>
    %91 = arith.truncf %88 : vector<64x16xf32> to vector<64x16xbf16>
    %cst_42 = arith.constant dense<0.000000e+00> : vector<64x128xf32>
    %92 = tpu.matmul %91, %90, %cst_42 {dimension_numbers = #tpu.dot_dimension_numbers<[1], [0], [0], [1], [0, 0, 1, 1], [], []>} : vector<64x16xbf16>, vector<16x128xbf16>, vector<64x128xf32> -> vector<64x128xf32>
    %93 = arith.addf %49, %92 : vector<64x128xf32>
    %c2 = arith.constant 2 : index
    %c0_43 = arith.constant 0 : index
    %c0_44 = arith.constant 0 : index
    %94 = vector.load %arg3[%c2, %c0_43, %c0_44] : memref<4x32x16xf32, #tpu.memory_space<vmem>>, vector<1x32x16xf32>
    %95 = vector.shape_cast %94 : vector<1x32x16xf32> to vector<32x16xf32>
    %96 = arith.truncf %95 : vector<32x16xf32> to vector<32x16xbf16>
    %cst_45 = arith.constant dense<0.000000e+00> : vector<64x16xf32>
    %97 = tpu.matmul %4, %96, %cst_45 {dimension_numbers = #tpu.dot_dimension_numbers<[1], [0], [0], [1], [0, 0, 1, 1], [], []>} : vector<64x32xbf16>, vector<32x16xbf16>, vector<64x16xf32> -> vector<64x16xf32>
    %c2_46 = arith.constant 2 : index
    %c0_47 = arith.constant 0 : index
    %98 = vector.load %arg4[%c2_46, %c0_47] : memref<4x16xf32, #tpu.memory_space<vmem>>, vector<1x16xf32>
    %c2_48 = arith.constant 2 : index
    %c0_49 = arith.constant 0 : index
    %99 = vector.load %arg5[%c2_48, %c0_49] : memref<4x16xf32, #tpu.memory_space<vmem>>, vector<1x16xf32>
    %100 = vector.broadcast %98 : vector<1x16xf32> to vector<64x16xf32>
    %101 = arith.mulf %97, %100 : vector<64x16xf32>
    %cst_50 = arith.constant dense<0.000000e+00> : vector<64xf32>
    %102 = vector.multi_reduction <add>, %101, %cst_50 [1] : vector<64x16xf32> to vector<64xf32>
    %103 = vector.shape_cast %102 : vector<64xf32> to vector<64x1xf32>
    %cst_51 = arith.constant dense<0.000000e+00> : vector<1x64xf32>
    %104 = tpu.matmul %99, %97, %cst_51 {dimension_numbers = #tpu.dot_dimension_numbers<[1], [1], [0], [0], [0, 0, 1, 0], [], []>} : vector<1x16xf32>, vector<64x16xf32>, vector<1x64xf32> -> vector<1x64xf32>
    %105 = vector.broadcast %103 : vector<64x1xf32> to vector<64x64xf32>
    %106 = vector.broadcast %104 : vector<1x64xf32> to vector<64x64xf32>
    %107 = arith.addf %105, %106 : vector<64x64xf32>
    %cst_52 = arith.constant 2.000000e-01 : f32
    %108 = vector.broadcast %cst_52 : f32 to vector<64x64xf32>
    %109 = arith.mulf %108, %107 : vector<64x64xf32>
    %110 = arith.maximumf %107, %109 : vector<64x64xf32>
    %111 = arith.addf %110, %3 : vector<64x64xf32>
    %cst_53 = arith.constant dense<0xFF800000> : vector<64xf32>
    %112 = vector.multi_reduction <maximumf>, %111, %cst_53 [1] : vector<64x64xf32> to vector<64xf32>
    %113 = vector.shape_cast %112 : vector<64xf32> to vector<64x1xf32>
    %114 = vector.broadcast %113 : vector<64x1xf32> to vector<64x64xf32>
    %115 = arith.subf %111, %114 : vector<64x64xf32>
    %116 = math.exp %115 : vector<64x64xf32>
    %cst_54 = arith.constant dense<0.000000e+00> : vector<64xf32>
    %117 = vector.multi_reduction <add>, %116, %cst_54 [1] : vector<64x64xf32> to vector<64xf32>
    %118 = vector.shape_cast %117 : vector<64xf32> to vector<64x1xf32>
    %119 = tpu.reciprocal %118 {approx = true} : vector<64x1xf32> -> vector<64x1xf32>
    %120 = vector.broadcast %119 : vector<64x1xf32> to vector<64x64xf32>
    %121 = arith.mulf %116, %120 : vector<64x64xf32>
    %122 = arith.truncf %121 : vector<64x64xf32> to vector<64x64xbf16>
    %123 = arith.truncf %97 : vector<64x16xf32> to vector<64x16xbf16>
    %cst_55 = arith.constant dense<0.000000e+00> : vector<64x16xf32>
    %124 = tpu.matmul %122, %123, %cst_55 {dimension_numbers = #tpu.dot_dimension_numbers<[1], [0], [0], [1], [0, 0, 1, 1], [], []>} : vector<64x64xbf16>, vector<64x16xbf16>, vector<64x16xf32> -> vector<64x16xf32>
    %cst_56 = arith.constant 0.000000e+00 : f32
    %125 = vector.broadcast %cst_56 : f32 to vector<64x16xf32>
    %126 = arith.cmpf ogt, %124, %125 : vector<64x16xf32>
    %cst_57 = arith.constant 0.000000e+00 : f32
    %127 = vector.broadcast %cst_57 : f32 to vector<64x16xf32>
    %128 = arith.minimumf %124, %127 : vector<64x16xf32>
    %129 = math.exp %128 : vector<64x16xf32>
    %cst_58 = arith.constant 1.000000e+00 : f32
    %130 = vector.broadcast %cst_58 : f32 to vector<64x16xf32>
    %131 = arith.subf %129, %130 : vector<64x16xf32>
    %132 = arith.select %126, %124, %131 : vector<64x16xi1>, vector<64x16xf32>
    %c32 = arith.constant 32 : index
    %c0_59 = arith.constant 0 : index
    %133 = vector.load %arg6[%c32, %c0_59] : memref<64x128xf32, #tpu.memory_space<vmem>>, vector<16x128xf32>
    %134 = arith.truncf %133 : vector<16x128xf32> to vector<16x128xbf16>
    %135 = arith.truncf %132 : vector<64x16xf32> to vector<64x16xbf16>
    %cst_60 = arith.constant dense<0.000000e+00> : vector<64x128xf32>
    %136 = tpu.matmul %135, %134, %cst_60 {dimension_numbers = #tpu.dot_dimension_numbers<[1], [0], [0], [1], [0, 0, 1, 1], [], []>} : vector<64x16xbf16>, vector<16x128xbf16>, vector<64x128xf32> -> vector<64x128xf32>
    %137 = arith.addf %93, %136 : vector<64x128xf32>
    %c3 = arith.constant 3 : index
    %c0_61 = arith.constant 0 : index
    %c0_62 = arith.constant 0 : index
    %138 = vector.load %arg3[%c3, %c0_61, %c0_62] : memref<4x32x16xf32, #tpu.memory_space<vmem>>, vector<1x32x16xf32>
    %139 = vector.shape_cast %138 : vector<1x32x16xf32> to vector<32x16xf32>
    %140 = arith.truncf %139 : vector<32x16xf32> to vector<32x16xbf16>
    %cst_63 = arith.constant dense<0.000000e+00> : vector<64x16xf32>
    %141 = tpu.matmul %4, %140, %cst_63 {dimension_numbers = #tpu.dot_dimension_numbers<[1], [0], [0], [1], [0, 0, 1, 1], [], []>} : vector<64x32xbf16>, vector<32x16xbf16>, vector<64x16xf32> -> vector<64x16xf32>
    %c3_64 = arith.constant 3 : index
    %c0_65 = arith.constant 0 : index
    %142 = vector.load %arg4[%c3_64, %c0_65] : memref<4x16xf32, #tpu.memory_space<vmem>>, vector<1x16xf32>
    %c3_66 = arith.constant 3 : index
    %c0_67 = arith.constant 0 : index
    %143 = vector.load %arg5[%c3_66, %c0_67] : memref<4x16xf32, #tpu.memory_space<vmem>>, vector<1x16xf32>
    %144 = vector.broadcast %142 : vector<1x16xf32> to vector<64x16xf32>
    %145 = arith.mulf %141, %144 : vector<64x16xf32>
    %cst_68 = arith.constant dense<0.000000e+00> : vector<64xf32>
    %146 = vector.multi_reduction <add>, %145, %cst_68 [1] : vector<64x16xf32> to vector<64xf32>
    %147 = vector.shape_cast %146 : vector<64xf32> to vector<64x1xf32>
    %cst_69 = arith.constant dense<0.000000e+00> : vector<1x64xf32>
    %148 = tpu.matmul %143, %141, %cst_69 {dimension_numbers = #tpu.dot_dimension_numbers<[1], [1], [0], [0], [0, 0, 1, 0], [], []>} : vector<1x16xf32>, vector<64x16xf32>, vector<1x64xf32> -> vector<1x64xf32>
    %149 = vector.broadcast %147 : vector<64x1xf32> to vector<64x64xf32>
    %150 = vector.broadcast %148 : vector<1x64xf32> to vector<64x64xf32>
    %151 = arith.addf %149, %150 : vector<64x64xf32>
    %cst_70 = arith.constant 2.000000e-01 : f32
    %152 = vector.broadcast %cst_70 : f32 to vector<64x64xf32>
    %153 = arith.mulf %152, %151 : vector<64x64xf32>
    %154 = arith.maximumf %151, %153 : vector<64x64xf32>
    %155 = arith.addf %154, %3 : vector<64x64xf32>
    %cst_71 = arith.constant dense<0xFF800000> : vector<64xf32>
    %156 = vector.multi_reduction <maximumf>, %155, %cst_71 [1] : vector<64x64xf32> to vector<64xf32>
    %157 = vector.shape_cast %156 : vector<64xf32> to vector<64x1xf32>
    %158 = vector.broadcast %157 : vector<64x1xf32> to vector<64x64xf32>
    %159 = arith.subf %155, %158 : vector<64x64xf32>
    %160 = math.exp %159 : vector<64x64xf32>
    %cst_72 = arith.constant dense<0.000000e+00> : vector<64xf32>
    %161 = vector.multi_reduction <add>, %160, %cst_72 [1] : vector<64x64xf32> to vector<64xf32>
    %162 = vector.shape_cast %161 : vector<64xf32> to vector<64x1xf32>
    %163 = tpu.reciprocal %162 {approx = true} : vector<64x1xf32> -> vector<64x1xf32>
    %164 = vector.broadcast %163 : vector<64x1xf32> to vector<64x64xf32>
    %165 = arith.mulf %160, %164 : vector<64x64xf32>
    %166 = arith.truncf %165 : vector<64x64xf32> to vector<64x64xbf16>
    %167 = arith.truncf %141 : vector<64x16xf32> to vector<64x16xbf16>
    %cst_73 = arith.constant dense<0.000000e+00> : vector<64x16xf32>
    %168 = tpu.matmul %166, %167, %cst_73 {dimension_numbers = #tpu.dot_dimension_numbers<[1], [0], [0], [1], [0, 0, 1, 1], [], []>} : vector<64x64xbf16>, vector<64x16xbf16>, vector<64x16xf32> -> vector<64x16xf32>
    %cst_74 = arith.constant 0.000000e+00 : f32
    %169 = vector.broadcast %cst_74 : f32 to vector<64x16xf32>
    %170 = arith.cmpf ogt, %168, %169 : vector<64x16xf32>
    %cst_75 = arith.constant 0.000000e+00 : f32
    %171 = vector.broadcast %cst_75 : f32 to vector<64x16xf32>
    %172 = arith.minimumf %168, %171 : vector<64x16xf32>
    %173 = math.exp %172 : vector<64x16xf32>
    %cst_76 = arith.constant 1.000000e+00 : f32
    %174 = vector.broadcast %cst_76 : f32 to vector<64x16xf32>
    %175 = arith.subf %173, %174 : vector<64x16xf32>
    %176 = arith.select %170, %168, %175 : vector<64x16xi1>, vector<64x16xf32>
    %c48 = arith.constant 48 : index
    %c0_77 = arith.constant 0 : index
    %177 = vector.load %arg6[%c48, %c0_77] : memref<64x128xf32, #tpu.memory_space<vmem>>, vector<16x128xf32>
    %178 = arith.truncf %177 : vector<16x128xf32> to vector<16x128xbf16>
    %179 = arith.truncf %176 : vector<64x16xf32> to vector<64x16xbf16>
    %cst_78 = arith.constant dense<0.000000e+00> : vector<64x128xf32>
    %180 = tpu.matmul %179, %178, %cst_78 {dimension_numbers = #tpu.dot_dimension_numbers<[1], [0], [0], [1], [0, 0, 1, 1], [], []>} : vector<64x16xbf16>, vector<16x128xbf16>, vector<64x128xf32> -> vector<64x128xf32>
    %181 = arith.addf %137, %180 : vector<64x128xf32>
    %c0_79 = arith.constant 0 : index
    %c0_80 = arith.constant 0 : index
    %182 = vector.load %arg7[%c0_79, %c0_80] : memref<1x128xf32, #tpu.memory_space<vmem>>, vector<1x128xf32>
    %c0_81 = arith.constant 0 : index
    %c0_82 = arith.constant 0 : index
    %183 = vector.load %arg8[%c0_81, %c0_82] : memref<1x128xf32, #tpu.memory_space<vmem>>, vector<1x128xf32>
    %184 = vector.broadcast %182 : vector<1x128xf32> to vector<64x128xf32>
    %185 = arith.mulf %181, %184 : vector<64x128xf32>
    %cst_83 = arith.constant dense<0.000000e+00> : vector<64xf32>
    %186 = vector.multi_reduction <add>, %185, %cst_83 [1] : vector<64x128xf32> to vector<64xf32>
    %187 = vector.shape_cast %186 : vector<64xf32> to vector<64x1xf32>
    %cst_84 = arith.constant dense<0.000000e+00> : vector<1x64xf32>
    %188 = tpu.matmul %183, %181, %cst_84 {dimension_numbers = #tpu.dot_dimension_numbers<[1], [1], [0], [0], [0, 0, 1, 0], [], []>} : vector<1x128xf32>, vector<64x128xf32>, vector<1x64xf32> -> vector<1x64xf32>
    %189 = vector.broadcast %187 : vector<64x1xf32> to vector<64x64xf32>
    %190 = vector.broadcast %188 : vector<1x64xf32> to vector<64x64xf32>
    %191 = arith.addf %189, %190 : vector<64x64xf32>
    %cst_85 = arith.constant 2.000000e-01 : f32
    %192 = vector.broadcast %cst_85 : f32 to vector<64x64xf32>
    %193 = arith.mulf %192, %191 : vector<64x64xf32>
    %194 = arith.maximumf %191, %193 : vector<64x64xf32>
    %195 = arith.addf %194, %3 : vector<64x64xf32>
    %cst_86 = arith.constant dense<0xFF800000> : vector<64xf32>
    %196 = vector.multi_reduction <maximumf>, %195, %cst_86 [1] : vector<64x64xf32> to vector<64xf32>
    %197 = vector.shape_cast %196 : vector<64xf32> to vector<64x1xf32>
    %198 = vector.broadcast %197 : vector<64x1xf32> to vector<64x64xf32>
    %199 = arith.subf %195, %198 : vector<64x64xf32>
    %200 = math.exp %199 : vector<64x64xf32>
    %cst_87 = arith.constant dense<0.000000e+00> : vector<64xf32>
    %201 = vector.multi_reduction <add>, %200, %cst_87 [1] : vector<64x64xf32> to vector<64xf32>
    %202 = vector.shape_cast %201 : vector<64xf32> to vector<64x1xf32>
    %203 = tpu.reciprocal %202 {approx = true} : vector<64x1xf32> -> vector<64x1xf32>
    %204 = vector.broadcast %203 : vector<64x1xf32> to vector<64x64xf32>
    %205 = arith.mulf %200, %204 : vector<64x64xf32>
    %206 = arith.truncf %205 : vector<64x64xf32> to vector<64x64xbf16>
    %207 = arith.truncf %181 : vector<64x128xf32> to vector<64x128xbf16>
    %cst_88 = arith.constant dense<0.000000e+00> : vector<64x128xf32>
    %208 = tpu.matmul %206, %207, %cst_88 {dimension_numbers = #tpu.dot_dimension_numbers<[1], [0], [0], [1], [0, 0, 1, 1], [], []>} : vector<64x64xbf16>, vector<64x128xbf16>, vector<64x128xf32> -> vector<64x128xf32>
    %cst_89 = arith.constant 0.000000e+00 : f32
    %209 = vector.broadcast %cst_89 : f32 to vector<64x128xf32>
    %210 = arith.cmpf ogt, %208, %209 : vector<64x128xf32>
    %cst_90 = arith.constant 0.000000e+00 : f32
    %211 = vector.broadcast %cst_90 : f32 to vector<64x128xf32>
    %212 = arith.minimumf %208, %211 : vector<64x128xf32>
    %213 = math.exp %212 : vector<64x128xf32>
    %cst_91 = arith.constant 1.000000e+00 : f32
    %214 = vector.broadcast %cst_91 : f32 to vector<64x128xf32>
    %215 = arith.subf %213, %214 : vector<64x128xf32>
    %216 = arith.select %210, %208, %215 : vector<64x128xi1>, vector<64x128xf32>
    %c0_92 = arith.constant 0 : index
    %c0_93 = arith.constant 0 : index
    %c0_94 = arith.constant 0 : index
    %217 = vector.load %arg9[%c0_92, %c0_93, %c0_94] : memref<1x64x128xf32, #tpu.memory_space<vmem>>, vector<1x64x128xf32>
    %218 = vector.shape_cast %217 : vector<1x64x128xf32> to vector<64x128xf32>
    %219 = vector.shape_cast %216 : vector<64x128xf32> to vector<1x64x128xf32>
    tpu.vector_store %arg9[%c0_92, %c0_93, %c0_94], %219 {strides = array<i32>} : memref<1x64x128xf32, #tpu.memory_space<vmem>>, vector<1x64x128xf32>,
    return
  }
  func.func @transform_0(%arg0: i32) -> (i32, i32, i32) {
    %c0_i32 = arith.constant 0 : i32
    %c0_i32_0 = arith.constant 0 : i32
    %c0_i32_1 = arith.constant 0 : i32
    return %arg0, %c0_i32, %c0_i32_0 : i32, i32, i32
  }
  func.func @transform_1(%arg0: i32) -> (i32, i32, i32) {
    %c0_i32 = arith.constant 0 : i32
    %c0_i32_0 = arith.constant 0 : i32
    %c0_i32_1 = arith.constant 0 : i32
    return %arg0, %c0_i32, %c0_i32_0 : i32, i32, i32
  }
  func.func @transform_2(%arg0: i32) -> (i32, i32, i32) {
    %c0_i32 = arith.constant 0 : i32
    %c0_i32_0 = arith.constant 0 : i32
    %c0_i32_1 = arith.constant 0 : i32
    %c0_i32_2 = arith.constant 0 : i32
    return %c0_i32, %c0_i32_0, %c0_i32_1 : i32, i32, i32
  }
  func.func @transform_3(%arg0: i32) -> (i32, i32) {
    %c0_i32 = arith.constant 0 : i32
    %c0_i32_0 = arith.constant 0 : i32
    %c0_i32_1 = arith.constant 0 : i32
    return %c0_i32, %c0_i32_0 : i32, i32
  }
  func.func @transform_4(%arg0: i32) -> (i32, i32) {
    %c0_i32 = arith.constant 0 : i32
    %c0_i32_0 = arith.constant 0 : i32
    %c0_i32_1 = arith.constant 0 : i32
    return %c0_i32, %c0_i32_0 : i32, i32
  }
  func.func @transform_5(%arg0: i32) -> (i32, i32) {
    %c0_i32 = arith.constant 0 : i32
    %c0_i32_0 = arith.constant 0 : i32
    %c0_i32_1 = arith.constant 0 : i32
    return %c0_i32, %c0_i32_0 : i32, i32
  }
  func.func @transform_6(%arg0: i32) -> (i32, i32) {
    %c0_i32 = arith.constant 0 : i32
    %c0_i32_0 = arith.constant 0 : i32
    %c0_i32_1 = arith.constant 0 : i32
    return %c0_i32, %c0_i32_0 : i32, i32
  }
  func.func @transform_7(%arg0: i32) -> (i32, i32) {
    %c0_i32 = arith.constant 0 : i32
    %c0_i32_0 = arith.constant 0 : i32
    %c0_i32_1 = arith.constant 0 : i32
    return %c0_i32, %c0_i32_0 : i32, i32
  }
  func.func @transform_8(%arg0: i32) -> (i32, i32, i32) {
    %c0_i32 = arith.constant 0 : i32
    %c0_i32_0 = arith.constant 0 : i32
    %c0_i32_1 = arith.constant 0 : i32
    return %arg0, %c0_i32, %c0_i32_0 : i32, i32, i32
  }
}

</mosaic_0001>

<bundles_post_ra>
// kernel: tpu_custom_call.1
= control target key start
LH: loop header
LB: loop body
LE: loop exit
PB: predicated region body
PF: predicated region fallthrough
CT: control target
= control target key end

     0   :  { %13 = vsyncpa [#allocation3], 0  ;;  %s4926_s0 = inlined_call_operand.vmem [shape: f32[8,64,32], index: 0, kind: input, shape index: {}]   ;;  %s4927_s1 = inlined_call_operand.vmem [shape: f32[8,64,64], index: 1, kind: input, shape index: {}]   ;;  %s4928_s2 = inlined_call_operand.vmem [shape: f32[4,32,16], index: 2, kind: input, shape index: {}]   ;;  %s4929_s3 = inlined_call_operand.vmem [shape: f32[4,16], index: 3, kind: input, shape index: {}]   ;;  %s4930_s4 = inlined_call_operand.vmem [shape: f32[4,16], index: 4, kind: input, shape index: {}]   ;;  %s4931_s5 = inlined_call_operand.vmem [shape: f32[64,128], index: 5, kind: input, shape index: {}]   ;;  %s4932_s6 = inlined_call_operand.vmem [shape: f32[1,128], index: 6, kind: input, shape index: {}]   ;;  %s4933_s7 = inlined_call_operand.vmem [shape: f32[1,128], index: 7, kind: input, shape index: {}]   ;;  %s4934_s8 = inlined_call_operand.hbm [shape: f32[8,64,128], index: 8, kind: output, shape index: {}]  }
   0x1   :  { %15 = vsyncpa [#allocation3 + $0x1], 0  ;;  %s4091_s27 = smov 0   ;;  %s4093_s28 = smov 0  }
   0x2   :  { %s4095_s29 = smov 0   ;;  %s4097_s30 = smov 0  }
   0x3 LB: > { %s4112_s9 = sadd.s32 4294967295, %s4038_s30   ;;  %s3022_s10 = sadd.s32 4294967294, %s4038_s30   ;;  %s4038_s30 = sphi %s4097_s30, %s4942_s30   ;;  %s4034_s29 = sphi %s4095_s29, %s4941_s29   ;;  %s4030_s28 = sphi %s4093_s28, %s4940_s28   ;;  %s4026_s27 = sphi %s4091_s27, %s4939_s27  }
   0x4   : > { %s4116_s11 = sadd.s32 1, %s4038_s30   ;;  %s206_s12 = sadd.s32 1, %s4034_s29 }
   0x5   : > { %s203_s13 = ssub.s32 %s4038_s30, %s4116_s11  ;;  %p216_p0 = scmp.ne.s32.totalorder %s4034_s29, %s4030_s28 }
   0x6   : > { %p204_p1 = scmp.eq.s32.totalorder %s203_s13, 0  ;;  %p217_p2 = scmp.eq.s32.totalorder %s4112_s9, 7 }
   0x7   : > { %p222_p3 = scmp.ne.s32.totalorder %s4030_s28, %s4026_s27  ;;  %p223_p4 = scmp.eq.s32.totalorder %s3022_s10, 7 }
   0x8   : > { %s4127_s14 = scalar_select %p204_p1, %s4034_s29, %s206_s12  }
   0x9   : > { %p4129_p5 = por %p217_p2, %p216_p0  ;;  %p4133_p6 = por %p223_p4, %p222_p3 }
   0xa   : > { %p3025_p7 = scmp.ge.s32.totalorder %s4038_s30, 1  ;;  %p275_p8 = scmp.lt.s32.totalorder %s4038_s30, 9 }
   0xc   : > { %p276_p9 = pnand %p3025_p7, %p275_p8 }
   0xd   : > { %v345_v0 = vld [vmem:[%s4928_s2] sm:$0xff] (!%p276_p9)  ;;  %v346_v1 = vld [vmem:[%s4928_s2 + $0x8] sm:$0xff] (!%p276_p9)  ;;  %v347_v2 = vld [vmem:[%s4928_s2 + $0x10] sm:$0xff] (!%p276_p9)  ;;  %p314_p10 = scmp.lt.s32.totalorder (!%p276_p9), %s4112_s9, 7  ;;  %vm351_vm0 = vcmask (!%p276_p9), 261120   ;;  %v4040_v18 = vmov (!%p276_p9), 0.0|0.0   ;;  %v565_v53 = vlaneseq (!%p276_p9) }
   0xe   : > { %279 = sbr.rel (%p276_p9) target bundleno = 4042 (0xfca), region = 52  ;;  %v349_v3 = vpack.c.bf16 (!%p276_p9), %v346_v1, %v345_v0  ;;  %v348_v4 = vld [vmem:[%s4928_s2 + $0x18] sm:$0xff] (!%p276_p9)  ;;  %3576 = vmatprep.subr.bf16.mxu1 (!%p276_p9), %v4040_v18  ;;  %vm4041_vm1 = vmmov (!%p276_p9), 0   ;;  %v4042_v19 = vmov (!%p276_p9), 0.0   ;;  %v3035_v20 = vld [vmem:[%s4929_s3] ss:$0 sm:$0xff] (!%p276_p9) }
   0xf   : > { %v350_v5 = vpack.c.bf16 (!%p276_p9), %v348_v4, %v347_v2  ;;  %3341 = vmatprep.mubr.msk.f32.mxu1 (!%p276_p9), %vm4041_vm1, %v4042_v19  ;;  %vm443_vm2 = vcmask (!%p276_p9), 130048   ;;  %v430_v50 = vld [vmem:[%s4930_s4] sm:$0x1] (!%p276_p9)  ;;  %v566_v54 = vshrl.u32 (!%p276_p9), %v565_v53, 7  ;;  %vm601_vm4 = vcmask (!%p276_p9), 523264   ;;  %s3183_s21 = sshll.u32 (!%p276_p9), %s4112_s9, 10 }
  0x10   : > { %3313 = vmatprep.subr.bf16.mxu0 (!%p276_p9), %v349_v3  ;;  %vm4186_vm3 = vmpackc.low (!%p276_p9), %vm443_vm2, %vm443_vm2  ;;  %s4043_s12 = smov (!%p276_p9), [#allocation2]  }
  0x11   : > { %3314 = vmatpush3.bf16.msra.mxu0 (!%p276_p9), %v349_v3  ;;  %v4215_v57 = vsub.s32 (!%p276_p9), 0, %v566_v54 }
  0x12   : > { %3315 = vmatprep.subr.bf16.mxu0 (!%p276_p9), %v350_v5 }
  0x15   : > { %s4153_s25 = scalar_select %p314_p10, %s4112_s9, 7  ;;  %3316 = vmatpush3.bf16.msra.mxu0 %v350_v5 }
  0x16   : > { %s4876_s9 = scalar_lea.hbm %s4934_s8, %s3183_s21 }
  0x17   : > { %s3181_s26 = sshll.u32 %s4153_s25, 6 }
  0x18   : > { %s318_s13 = scalar_lea.vmem %s4926_s0, %s3181_s26  ;;  %s4223_s23 = scalar_lea.vmem %s4927_s1, %s3181_s26 }
  0x19   : > { %v325_v6 = vld [vmem:[%s318_s13] sm:$0xff]  ;;  %v326_v7 = vld [vmem:[%s318_s13 + $0x8] sm:$0xff]  ;;  %v327_v8 = vld [vmem:[%s318_s13 + $0x10] sm:$0xff] }
  0x1a   : > { %v4161_v9 = vpack.c.bf16 %v326_v7, %v325_v6  ;;  %v328_v10 = vld [vmem:[%s318_s13 + $0x18] sm:$0xff]  ;;  %v329_v11 = vld [vmem:[%s318_s13 + $0x20] sm:$0xff]  ;;  %v330_v12 = vld [vmem:[%s318_s13 + $0x28] sm:$0xff] }
  0x1b   : > { %v4163_v13 = vpack.c.bf16 %v328_v10, %v327_v8  ;;  %v4165_v14 = vpack.c.bf16 %v330_v12, %v329_v11  ;;  %v331_v15 = vld [vmem:[%s318_s13 + $0x30] sm:$0xff]  ;;  %v332_v16 = vld [vmem:[%s318_s13 + $0x38] sm:$0xff]  ;;  %v4226_v4 = vld [vmem:[%s4223_s23] sm:$0xff]  ;;  %s3980_s13 = sshll.u32 %s4043_s12, 4  ;;  %s3981_s13 = int_to_ptr.vmem [resolvable:$false] %s3980_s13 }
  0x1c   : > { %3317 = vmatprep.mubr.msk.bf16.mxu0 %vm351_vm0, %v4161_v9  ;;  %v4173_v17 = vpack.c.bf16 %v332_v16, %v331_v15  ;;  %v4229_v5 = vld [vmem:[%s4223_s23 + $0x8] sm:$0xff]  ;;  %s3982_s17 = scalar_lea.vmem %s3981_s13, 2048 }
  0x1d   : > { %3318 = vmatmul.mubr.msk.bf16.vlgmr.msra.gmra.mrb[0].mxu0 %vm351_vm0, %v4163_v13 }
  0x1e   : > { %3321 = vmatprep.mubr.msk.bf16.mxu0 %vm351_vm0, %v4165_v14 }
  0x25   : > { %3322 = vmatmul.mubr.msk.bf16.gmra.mrb[4].mxu0 %vm351_vm0, %v4173_v17 }
  0xf0   : > { %v3319_v21 = vpop.f32.mrb[0].mxu0 }
  0xf1   : > { %v398_v22 = vpop.f32.mrb[1].mxu0  ;;  %v437_v23 = vmul.f32 %v3319_v21, %v3035_v20 }
  0xf2   : > { %v3320_v24 = vpop.f32.mrb[2].mxu0  ;;  %v435_v25 = vmul.f32 %v3035_v20, %v398_v22 }
  0xf3   : > { %v438_v26 = vmul.f32 %v3320_v24, %v3035_v20  ;;  %v3581_v27 = vpack.c.bf16 %v3320_v24, %v3319_v21  ;;  %v401_v28 = vpop.f32.mrb[3].mxu0  ;;  %v450_v29 = vsel %vm443_vm2, %v437_v23, 0.0 }
  0xf4   : > { %v436_v31 = vmul.f32 %v3035_v20, %v401_v28  ;;  %v3577_v32 = vpack.c.bf16 %v401_v28, %v398_v22  ;;  %451 = vadd.xlane.f32.xlu1 %v450_v29  ;;  %v444_v33 = vsel %vm443_vm2, %v435_v25, 0.0 }
  0xf5   : > { %445 = vadd.xlane.f32.xlu0 %v444_v33  ;;  %v453_v34 = vsel %vm443_vm2, %v438_v26, 0.0  ;;  %v4232_v26 = vld [vmem:[%s4223_s23 + $0x10] sm:$0xff] }
  0xf6   : > { %3579 = vmatpush3.bf16.xpose.msk.msra.mxu1 %vm4186_vm3, %v3577_v32  ;;  %3344 = vmatprep.subr.bf16.mxu0 %v3577_v32  ;;  %v447_v36 = vsel %vm443_vm2, %v436_v31, 0.0 }
  0xf7   : > { %3345 = vmatpush3.bf16.msra.mxu0 %v3577_v32  ;;  %3580 = vmatprep.subr.bf16.mxu1 %v4040_v18 }
  0xf8   : > { %454 = vadd.xlane.f32.xlu1 %v453_v34  ;;  %v3323_v35 = vpop.f32.mrb[4].mxu0  ;;  %3346 = vmatprep.subr.bf16.mxu0 %v3581_v27 }
  0xf9   : > { %448 = vadd.xlane.f32.xlu0 %v447_v36  ;;  %v414_v37 = vpop.f32.mrb[5].mxu0  ;;  %v441_v38 = vmul.f32 %v3323_v35, %v3035_v20 }
  0xfa   : > { %v439_v39 = vmul.f32 %v3035_v20, %v414_v37  ;;  %v3324_v40 = vpop.f32.mrb[6].mxu0 }
  0xfb   : > { %v3589_v41 = vpack.c.bf16 %v3324_v40, %v3323_v35  ;;  %v417_v42 = vpop.f32.mrb[7].mxu0  ;;  %3347 = vmatpush3.bf16.msra.mxu0 %v3581_v27  ;;  %v442_v43 = vmul.f32 %v3324_v40, %v3035_v20  ;;  %v462_v48 = vsel %vm443_vm2, %v441_v38, 0.0  ;;  %v4244_v40 = vld [vmem:[%s4223_s23 + $0x20] sm:$0xff] }
  0xfc   : > { %v440_v44 = vmul.f32 %v3035_v20, %v417_v42  ;;  %v3585_v45 = vpack.c.bf16 %v417_v42, %v414_v37  ;;  %v456_v46 = vsel %vm443_vm2, %v439_v39, 0.0 }
  0xfd   : > { %457 = vadd.xlane.f32.xlu0 %v456_v46  ;;  %v465_v49 = vsel %vm443_vm2, %v442_v43, 0.0 }
  0xfe   : > { %3583 = vmatpush3.bf16.xpose.msk.msra.mxu1 %vm4186_vm3, %v3581_v27  ;;  %3348 = vmatprep.subr.bf16.mxu0 %v3585_v45  ;;  %v459_v47 = vsel %vm443_vm2, %v440_v44, 0.0  ;;  %v4235_v27 = vld [vmem:[%s4223_s23 + $0x18] sm:$0xff] }
  0xff   : > { %3349 = vmatpush3.bf16.msra.mxu0 %v3585_v45  ;;  %460 = vadd.xlane.f32.xlu1 %v459_v47 }
 0x100   : > { %3350 = vmatprep.subr.bf16.mxu0 %v3589_v41  ;;  %3584 = vmatprep.subr.bf16.mxu1 %v4040_v18 }
 0x101   : > { %463 = vadd.xlane.f32.xlu0 %v462_v48  ;;  %v4254_v48 = vld [vmem:[%s4223_s23 + $0x30] sm:$0xff] }
 0x103   : > { %3351 = vmatpush3.bf16.msra.mxu0 %v3589_v41  ;;  %466 = vadd.xlane.f32.xlu1 %v465_v49  ;;  %v4257_v49 = vld [vmem:[%s4223_s23 + $0x38] sm:$0xff] }
 0x106   : > { %3587 = vmatpush3.bf16.xpose.msk.msra.mxu1 %vm4186_vm3, %v3585_v45 }
 0x107   : > { %3588 = vmatprep.subr.bf16.mxu1 %v4040_v18 }
 0x10e   : > { %3591 = vmatpush3.bf16.xpose.msk.msra.mxu1 %vm4186_vm3, %v3589_v41  ;;  %v4247_v41 = vld [vmem:[%s4223_s23 + $0x28] sm:$0xff] }
 0x10f   : > { %3592 = vmatprep.subr.bf16.mxu1 %v4040_v18 }
 0x115   : > { %3342 = vmatmul.mubr.msk.f32.vlgmr.msra.gmra.mrb[0].mxu1 %vm443_vm2, %v430_v50 }
 0x116   : > { %3388 = vmatprep.mubr.msk.f32.mxu1 %vm4041_vm1, %v4042_v19 }
 0x181   : > { %v452_v52 = vpop.xlane.xlu1 %451 }
 0x182   : > { %v446_v51 = vpop.xlane.xlu0 %445 }
 0x185   : > { %v455_v56 = vpop.xlane.xlu1 %454 }
 0x186   : > { %v449_v55 = vpop.xlane.xlu0 %448 }
 0x18a   : > { %v458_v58 = vpop.xlane.xlu0 %457 }
 0x18c   : > { %v461_v59 = vpop.xlane.xlu1 %460 }
 0x18e   : > { %v464_v3 = vpop.xlane.xlu0 %463 }
 0x190   : > { %v467_v8 = vpop.xlane.xlu1 %466 }
 0x1e8   : > { %v561_v60 = vpop.f32.mrb[0].mxu1 }
 0x1e9   : > { %v568_v61 = vrot.slane %v561_v60, %v4215_v57  ;;  %v3343_v62 = vpop.f32.mrb[1].mxu1 }
 0x1eb   : > { %v569_v63 = vadd.f32 %v568_v61, %v446_v51  ;;  %v570_v0 = vadd.f32 %v568_v61, %v449_v55  ;;  %v571_v1 = vadd.f32 %v568_v61, %v452_v52  ;;  %v572_v2 = vadd.f32 %v568_v61, %v455_v56 }
 0x1ec   : > { %v573_v6 = vadd.f32 %v568_v61, %v458_v58  ;;  %v574_v7 = vadd.f32 %v568_v61, %v461_v59  ;;  %v575_v15 = vadd.f32 %v568_v61, %v464_v3  ;;  %v576_v22 = vadd.f32 %v568_v61, %v467_v8 }
 0x1ed   : > { %v577_v10 = vmul.f32 0.2, %v569_v63  ;;  %v578_v11 = vmul.f32 0.2, %v570_v0  ;;  %v579_v12 = vmul.f32 0.2, %v571_v1 }
 0x1ee   : > { %v580_v16 = vmul.f32 0.2, %v572_v2  ;;  %v581_v20 = vmul.f32 0.2, %v573_v6  ;;  %v582_v21 = vmul.f32 0.2, %v574_v7 }
 0x1ef   : > { %v585_v23 = vmax.f32 %v569_v63, %v577_v10  ;;  %v586_v24 = vmax.f32 %v570_v0, %v578_v11  ;;  %v587_v25 = vmax.f32 %v571_v1, %v579_v12  ;;  %v583_v34 = vmul.f32 0.2, %v575_v15 }
 0x1f0   : > { %v588_v28 = vmax.f32 %v572_v2, %v580_v16  ;;  %v589_v32 = vmax.f32 %v573_v6, %v581_v20  ;;  %v590_v33 = vmax.f32 %v574_v7, %v582_v21  ;;  %v584_v35 = vmul.f32 0.2, %v576_v22 }
 0x1f1   : > { %v593_v29 = vadd.f32 %v585_v23, %v4226_v4  ;;  %v594_v31 = vadd.f32 %v586_v24, %v4229_v5  ;;  %v595_v38 = vadd.f32 %v587_v25, %v4232_v26  ;;  %v591_v43 = vmax.f32 %v575_v15, %v583_v34 }
 0x1f2   : > { %v596_v39 = vadd.f32 %v588_v28, %v4235_v27  ;;  %v597_v42 = vadd.f32 %v589_v32, %v4244_v40  ;;  %v598_v46 = vadd.f32 %v590_v33, %v4247_v41  ;;  %v592_v47 = vmax.f32 %v576_v22, %v584_v35 }
 0x1f3   : > { %v602_v36 = vsel %vm601_vm4, %v593_v29, -inf  ;;  %v605_v37 = vsel %vm601_vm4, %v594_v31, -inf  ;;  %v608_v44 = vsel %vm601_vm4, %v595_v38, -inf  ;;  %v599_v52 = vadd.f32 %v591_v43, %v4254_v48 }
 0x1f4   : > { %603 = vmax.xlane.f32.xlu0 %v602_v36  ;;  %606 = vmax.xlane.f32.xlu1 %v605_v37  ;;  %v611_v45 = vsel %vm601_vm4, %v596_v39, -inf  ;;  %v614_v50 = vsel %vm601_vm4, %v597_v42, -inf  ;;  %v617_v51 = vsel %vm601_vm4, %v598_v46, -inf  ;;  %v600_v53 = vadd.f32 %v592_v47, %v4257_v49  ;;  %v3058_v47 = vld [vmem:[%s4928_s2 + $0x28] sm:$0xff] }
 0x1f5   : > { %v620_v54 = vsel %vm601_vm4, %v599_v52, -inf }
 0x1f6   : > { %v623_v55 = vsel %vm601_vm4, %v600_v53, -inf }
 0x1f8   : > { %609 = vmax.xlane.f32.xlu0 %v608_v44  ;;  %612 = vmax.xlane.f32.xlu1 %v611_v45 }
 0x1fc   : > { %615 = vmax.xlane.f32.xlu0 %v614_v50  ;;  %618 = vmax.xlane.f32.xlu1 %v617_v51 }
 0x200   : > { %621 = vmax.xlane.f32.xlu0 %v620_v54  ;;  %624 = vmax.xlane.f32.xlu1 %v623_v55 }
 0x281   : > { %v604_v56 = vpop.xlane.xlu0 %603  ;;  %v607_v58 = vpop.xlane.xlu1 %606 }
 0x282   : > { %v626_v59 = vsub.f32 %v593_v29, %v604_v56  ;;  %v627_v60 = vsub.f32 %v594_v31, %v607_v58 }
 0x284   : > { %v634_v61 = vmul.f32 1.442695, %v626_v59  ;;  %v636_v62 = vmul.f32 1.442695, %v627_v60 }
 0x285   : > { %v610_v63 = vpop.xlane.xlu0 %609  ;;  %v613_v0 = vpop.xlane.xlu1 %612 }
 0x286   : > { %3720 = vpow2.f32 %v634_v61  ;;  %v628_v1 = vsub.f32 %v595_v38, %v610_v63  ;;  %v629_v2 = vsub.f32 %v596_v39, %v613_v0 }
 0x287   : > { %3722 = vpow2.f32 %v636_v62 }
 0x288   : > { %v638_v3 = vmul.f32 1.442695, %v628_v1  ;;  %v640_v6 = vmul.f32 1.442695, %v629_v2 }
 0x289   : > { %v616_v7 = vpop.xlane.xlu0 %615  ;;  %v619_v8 = vpop.xlane.xlu1 %618 }
 0x28a   : > { %3724 = vpow2.f32 %v638_v3  ;;  %v630_v10 = vsub.f32 %v597_v42, %v616_v7  ;;  %v631_v11 = vsub.f32 %v598_v46, %v619_v8  ;;  %v3057_v46 = vld [vmem:[%s4928_s2 + $0x20] sm:$0xff]  ;;  %v3060_v7 = vld [vmem:[%s4928_s2 + $0x38] sm:$0xff] }
 0x28b   : > { %3726 = vpow2.f32 %v640_v6  ;;  %v835_v50 = vpack.c.bf16 %v3058_v47, %v3057_v46  ;;  %v3059_v6 = vld [vmem:[%s4928_s2 + $0x30] sm:$0xff] }
 0x28c   : > { %v642_v12 = vmul.f32 1.442695, %v630_v10  ;;  %v644_v15 = vmul.f32 1.442695, %v631_v11 }
 0x28d   : > { %v622_v16 = vpop.xlane.xlu0 %621  ;;  %v625_v20 = vpop.xlane.xlu1 %624  ;;  %3360 = vmatprep.subr.bf16.mxu0 %v835_v50 }
 0x28e   : > { %3728 = vpow2.f32 %v642_v12  ;;  %v632_v21 = vsub.f32 %v599_v52, %v622_v16  ;;  %v633_v22 = vsub.f32 %v600_v53, %v625_v20  ;;  %v836_v12 = vpack.c.bf16 %v3060_v7, %v3059_v6 }
 0x28f   : > { %3730 = vpow2.f32 %v644_v15 }
 0x290   : > { %v3721_v23 = vpop.eup %3720  ;;  %v646_v24 = vmul.f32 1.442695, %v632_v21  ;;  %v648_v25 = vmul.f32 1.442695, %v633_v22 }
 0x291   : > { %v3723_v28 = vpop.eup %3722  ;;  %v650_v29 = vsel %vm601_vm4, %v3721_v23, 0.0 }
 0x292   : > { %3732 = vpow2.f32 %v646_v24  ;;  %651 = vadd.xlane.f32.xlu0 %v650_v29  ;;  %v653_v31 = vsel %vm601_vm4, %v3723_v28, 0.0 }
 0x293   : > { %3734 = vpow2.f32 %v648_v25  ;;  %654 = vadd.xlane.f32.xlu1 %v653_v31 }
 0x294   : > { %v3725_v32 = vpop.eup %3724 }
 0x295   : > { %v3727_v33 = vpop.eup %3726  ;;  %v656_v34 = vsel %vm601_vm4, %v3725_v32, 0.0 }
 0x296   : > { %657 = vadd.xlane.f32.xlu0 %v656_v34  ;;  %v659_v35 = vsel %vm601_vm4, %v3727_v33, 0.0 }
 0x297   : > { %660 = vadd.xlane.f32.xlu1 %v659_v35 }
 0x298   : > { %v3729_v36 = vpop.eup %3728 }
 0x299   : > { %v3731_v37 = vpop.eup %3730  ;;  %v662_v38 = vsel %vm601_vm4, %v3729_v36, 0.0 }
 0x29a   : > { %663 = vadd.xlane.f32.xlu0 %v662_v38  ;;  %v665_v39 = vsel %vm601_vm4, %v3731_v37, 0.0 }
 0x29b   : > { %666 = vadd.xlane.f32.xlu1 %v665_v39 }
 0x29c   : > { %v3733_v42 = vpop.eup %3732 }
 0x29d   : > { %v3735_v43 = vpop.eup %3734  ;;  %v668_v44 = vsel %vm601_vm4, %v3733_v42, 0.0 }
 0x29e   : > { %669 = vadd.xlane.f32.xlu0 %v668_v44  ;;  %v671_v45 = vsel %vm601_vm4, %v3735_v43, 0.0 }
 0x29f   : > { %672 = vadd.xlane.f32.xlu1 %v671_v45 }
 0x31f   : > { %v652_v51 = vpop.xlane.xlu0 %651 }
 0x320   : > { %3736 = vrcp.f32 %v652_v51  ;;  %v655_v52 = vpop.xlane.xlu1 %654 }
 0x321   : > { %3738 = vrcp.f32 %v655_v52 }
 0x323   : > { %v658_v53 = vpop.xlane.xlu0 %657 }
 0x324   : > { %3740 = vrcp.f32 %v658_v53  ;;  %v661_v54 = vpop.xlane.xlu1 %660 }
 0x325   : > { %3742 = vrcp.f32 %v661_v54 }
 0x327   : > { %v664_v55 = vpop.xlane.xlu0 %663 }
 0x328   : > { %3744 = vrcp.f32 %v664_v55  ;;  %v667_v56 = vpop.xlane.xlu1 %666 }
 0x329   : > { %3746 = vrcp.f32 %v667_v56 }
 0x32a   : > { %v3737_v58 = vpop.eup %3736 }
 0x32b   : > { %v3739_v59 = vpop.eup %3738  ;;  %v670_v60 = vpop.xlane.xlu0 %669  ;;  %v682_v61 = vmul.f32 %v3737_v58, %v3721_v23 }
 0x32c   : > { %3748 = vrcp.f32 %v670_v60  ;;  %v673_v62 = vpop.xlane.xlu1 %672  ;;  %v683_v63 = vmul.f32 %v3739_v59, %v3723_v28  ;;  %v4312_v60 = vld [vmem:[%s4929_s3 + $0x1] ss:$0 sm:$0xff] }
 0x32d   : > { %3750 = vrcp.f32 %v673_v62 }
 0x32e   : > { %v3741_v0 = vpop.eup %3740  ;;  %v690_v1 = vpack.c.bf16 %v683_v63, %v682_v61 }
 0x32f   : > { %v3743_v2 = vpop.eup %3742  ;;  %v684_v3 = vmul.f32 %v3741_v0, %v3725_v32 }
 0x330   : > { %v685_v8 = vmul.f32 %v3743_v2, %v3727_v33  ;;  %3352 = vmatprep.mubr.msk.bf16.mxu0 %vm601_vm4, %v690_v1 }
 0x332   : > { %v3745_v10 = vpop.eup %3744  ;;  %v691_v11 = vpack.c.bf16 %v685_v8, %v684_v3 }
 0x333   : > { %v3747_v15 = vpop.eup %3746  ;;  %v686_v16 = vmul.f32 %v3745_v10, %v3729_v36 }
 0x334   : > { %3353 = vmatmul.mubr.msk.bf16.vlgmr.msra.gmra.mrb[8].mxu0 %vm601_vm4, %v691_v11  ;;  %v687_v20 = vmul.f32 %v3747_v15, %v3731_v37 }
 0x335   : > { %3361 = vmatpush3.bf16.msra.mxu0 %v835_v50 }
 0x336   : > { %v3749_v21 = vpop.eup %3748  ;;  %v692_v22 = vpack.c.bf16 %v687_v20, %v686_v16  ;;  %3362 = vmatprep.subr.bf16.mxu0 %v836_v12 }
 0x337   : > { %v3751_v23 = vpop.eup %3750  ;;  %v688_v24 = vmul.f32 %v3749_v21, %v3733_v42 }
 0x338   : > { %3356 = vmatprep.mubr.msk.bf16.mxu0 %vm601_vm4, %v692_v22  ;;  %v689_v25 = vmul.f32 %v3751_v23, %v3735_v43 }
 0x339   : > { %3363 = vmatpush3.bf16.msra.mxu0 %v836_v12 }
 0x33a   : > { %v693_v28 = vpack.c.bf16 %v689_v25, %v688_v24 }
 0x33c   : > { %3357 = vmatmul.mubr.msk.bf16.gmra.mrb[12].mxu0 %vm601_vm4, %v693_v28 }
 0x33d   : > { %3364 = vmatprep.mubr.msk.bf16.mxu0 %vm351_vm0, %v4161_v9 }
 0x344   : > { %3365 = vmatmul.mubr.msk.bf16.vlgmr.msra.gmra.mrb[16].mxu0 %vm351_vm0, %v4163_v13 }
 0x345   : > { %3368 = vmatprep.mubr.msk.bf16.mxu0 %vm351_vm0, %v4165_v14 }
 0x34c   : > { %3369 = vmatmul.mubr.msk.bf16.gmra.mrb[20].mxu0 %vm351_vm0, %v4173_v17 }
 0x407   : > { %v3354_v29 = vpop.f32.mrb[8].mxu0 }
 0x408   : > { %v785_v31 = vmin.f32 %v3354_v29, 0.0  ;;  %v744_v32 = vpop.f32.mrb[9].mxu0  ;;  %vm777_vm5 = vcmp.gt.f32.partialorder %v3354_v29, 0.0 }
 0x409   : > { %v783_v33 = vmin.f32 %v744_v32, 0.0  ;;  %v3355_v34 = vpop.f32.mrb[10].mxu0  ;;  %vm775_vm6 = vcmp.gt.f32.partialorder %v744_v32, 0.0 }
 0x40a   : > { %v795_v35 = vmul.f32 1.442695, %v785_v31  ;;  %v786_v36 = vmin.f32 %v3355_v34, 0.0  ;;  %v747_v37 = vpop.f32.mrb[11].mxu0  ;;  %vm778_vm7 = vcmp.gt.f32.partialorder %v3355_v34, 0.0 }
 0x40b   : > { %v791_v38 = vmul.f32 1.442695, %v783_v33  ;;  %v784_v39 = vmin.f32 %v747_v37, 0.0  ;;  %vm776_vm8 = vcmp.gt.f32.partialorder %v747_v37, 0.0 }
 0x40c   : > { %3752 = vpow2.f32 %v795_v35  ;;  %v797_v42 = vmul.f32 1.442695, %v786_v36 }
 0x40d   : > { %3754 = vpow2.f32 %v791_v38  ;;  %v793_v43 = vmul.f32 1.442695, %v784_v39 }
 0x40e   : > { %3756 = vpow2.f32 %v797_v42 }
 0x40f   : > { %3758 = vpow2.f32 %v793_v43  ;;  %v4297_v44 = vpop.f32.mrb[12].mxu0 }
 0x410   : > { %v789_v45 = vmin.f32 %v4297_v44, 0.0  ;;  %v4300_v46 = vpop.f32.mrb[13].mxu0  ;;  %vm781_vm9 = vcmp.gt.f32.partialorder %v4297_v44, 0.0 }
 0x411   : > { %v787_v47 = vmin.f32 %v4300_v46, 0.0  ;;  %v4303_v50 = vpop.f32.mrb[14].mxu0  ;;  %vm779_vm10 = vcmp.gt.f32.partialorder %v4300_v46, 0.0 }
 0x412   : > { %v803_v51 = vmul.f32 1.442695, %v789_v45  ;;  %v790_v52 = vmin.f32 %v4303_v50, 0.0  ;;  %v4306_v53 = vpop.f32.mrb[15].mxu0  ;;  %vm782_vm11 = vcmp.gt.f32.partialorder %v4303_v50, 0.0 }
 0x413   : > { %v799_v54 = vmul.f32 1.442695, %v787_v47  ;;  %v788_v55 = vmin.f32 %v4306_v53, 0.0  ;;  %vm780_vm12 = vcmp.gt.f32.partialorder %v4306_v53, 0.0 }
 0x414   : > { %3760 = vpow2.f32 %v803_v51  ;;  %v805_v56 = vmul.f32 1.442695, %v790_v52 }
 0x415   : > { %3762 = vpow2.f32 %v799_v54  ;;  %v801_v58 = vmul.f32 1.442695, %v788_v55 }
 0x416   : > { %v3753_v59 = vpop.eup %3752  ;;  %3764 = vpow2.f32 %v805_v56 }
 0x417   : > { %v3755_v61 = vpop.eup %3754  ;;  %v3051_v62 = vadd.f32 -1.0, %v3753_v59  ;;  %3766 = vpow2.f32 %v801_v58  ;;  %v3366_v63 = vpop.f32.mrb[16].mxu0 }
 0x418   : > { %v3757_v0 = vpop.eup %3756  ;;  %v3049_v1 = vadd.f32 -1.0, %v3755_v61  ;;  %v871_v2 = vpop.f32.mrb[17].mxu0  ;;  %v910_v12 = vmul.f32 %v3366_v63, %v4312_v60 }
 0x419   : > { %v3759_v3 = vpop.eup %3758  ;;  %v3052_v6 = vadd.f32 -1.0, %v3757_v0  ;;  %v908_v7 = vmul.f32 %v4312_v60, %v871_v2  ;;  %v3367_v8 = vpop.f32.mrb[18].mxu0  ;;  %v4315_v10 = vsel %vm777_vm5, %v3354_v29, %v3051_v62 }
 0x41a   : > { %v3050_v11 = vadd.f32 -1.0, %v3759_v3  ;;  %v3597_v15 = vpack.c.bf16 %v3367_v8, %v3366_v63  ;;  %v874_v16 = vpop.f32.mrb[19].mxu0  ;;  %v4323_v24 = vsel %vm775_vm6, %v744_v32, %v3049_v1  ;;  %v911_v31 = vmul.f32 %v3367_v8, %v4312_v60 }
 0x41b   : > { %v4318_v20 = vsel %vm778_vm7, %v3355_v34, %v3052_v6  ;;  %v909_v21 = vmul.f32 %v4312_v60, %v874_v16  ;;  %v3593_v22 = vpack.c.bf16 %v874_v16, %v871_v2  ;;  %v916_v23 = vsel %vm443_vm2, %v908_v7, 0.0 }
 0x41c   : > { %v827_v25 = vpack.c.bf16 %v4318_v20, %v4315_v10  ;;  %v4327_v28 = vsel %vm776_vm8, %v747_v37, %v3050_v11  ;;  %917 = vadd.xlane.f32.xlu0 %v916_v23  ;;  %v922_v37 = vsel %vm443_vm2, %v910_v12, 0.0  ;;  %v925_v54 = vsel %vm443_vm2, %v911_v31, 0.0  ;;  %v3131_v10 = vld [vmem:[%s4928_s2 + $0x70] sm:$0xff]  ;;  %v3132_v20 = vld [vmem:[%s4928_s2 + $0x78] sm:$0xff] }
 0x41d   : > { %v826_v29 = vpack.c.bf16 %v4327_v28, %v4323_v24  ;;  %3595 = vmatpush3.bf16.xpose.msk.msra.mxu1 %vm4186_vm3, %v3593_v22  ;;  %3391 = vmatprep.subr.bf16.mxu0 %v3593_v22  ;;  %v919_v33 = vsel %vm443_vm2, %v909_v21, 0.0  ;;  %v2017_v28 = vpack.c.bf16 %v3132_v20, %v3131_v10 }
 0x41e   : > { %v3761_v34 = vpop.eup %3760  ;;  %3392 = vmatpush3.bf16.msra.mxu0 %v3593_v22  ;;  %920 = vadd.xlane.f32.xlu1 %v919_v33 }
 0x41f   : > { %v3763_v32 = vpop.eup %3762  ;;  %v3055_v35 = vadd.f32 -1.0, %v3761_v34  ;;  %v3370_v36 = vpop.f32.mrb[20].mxu0  ;;  %3393 = vmatprep.subr.bf16.mxu0 %v3597_v15  ;;  %3596 = vmatprep.subr.bf16.mxu1 %v4040_v18 }
 0x420   : > { %v3765_v38 = vpop.eup %3764  ;;  %v3053_v39 = vadd.f32 -1.0, %v3763_v32  ;;  %923 = vadd.xlane.f32.xlu0 %v922_v37  ;;  %v887_v42 = vpop.f32.mrb[21].mxu0  ;;  %v914_v47 = vmul.f32 %v3370_v36, %v4312_v60 }
 0x421   : > { %v3767_v43 = vpop.eup %3766  ;;  %v3056_v45 = vadd.f32 -1.0, %v3765_v38  ;;  %v912_v51 = vmul.f32 %v4312_v60, %v887_v42  ;;  %v3371_v52 = vpop.f32.mrb[22].mxu0  ;;  %v4347_v55 = vsel %vm781_vm9, %v4297_v44, %v3055_v35 }
 0x422   : > { %v3054_v56 = vadd.f32 -1.0, %v3767_v43  ;;  %v915_v58 = vmul.f32 %v3371_v52, %v4312_v60  ;;  %v3605_v59 = vpack.c.bf16 %v3371_v52, %v3370_v36  ;;  %3394 = vmatpush3.bf16.msra.mxu0 %v3597_v15  ;;  %926 = vadd.xlane.f32.xlu1 %v925_v54  ;;  %v890_v61 = vpop.f32.mrb[23].mxu0  ;;  %v4360_v44 = vsel %vm779_vm10, %v4300_v46, %v3053_v39 }
 0x423   : > { %v4353_v62 = vsel %vm782_vm11, %v4303_v50, %v3056_v45  ;;  %v913_v63 = vmul.f32 %v4312_v60, %v890_v61  ;;  %v3601_v0 = vpack.c.bf16 %v890_v61, %v887_v42  ;;  %v928_v1 = vsel %vm443_vm2, %v912_v51, 0.0 }
 0x424   : > { %v829_v2 = vpack.c.bf16 %v4353_v62, %v4347_v55  ;;  %v4367_v3 = vsel %vm780_vm12, %v4306_v53, %v3054_v56  ;;  %929 = vadd.xlane.f32.xlu0 %v928_v1  ;;  %v934_v46 = vsel %vm443_vm2, %v914_v47, 0.0  ;;  %v937_v6 = vsel %vm443_vm2, %v915_v58, 0.0  ;;  %v903_v53 = vld [vmem:[%s4930_s4 + $0x1] sm:$0x1] }
 0x425   : > { %v828_v50 = vpack.c.bf16 %v4367_v3, %v4360_v44  ;;  %3599 = vmatpush3.bf16.xpose.msk.msra.mxu1 %vm4186_vm3, %v3597_v15  ;;  %3395 = vmatprep.subr.bf16.mxu0 %v3601_v0  ;;  %v931_v60 = vsel %vm443_vm2, %v913_v63, 0.0 }
 0x426   : > { %3396 = vmatpush3.bf16.msra.mxu0 %v3601_v0  ;;  %932 = vadd.xlane.f32.xlu1 %v931_v60 }
 0x427   : > { %3397 = vmatprep.subr.bf16.mxu0 %v3605_v59  ;;  %3600 = vmatprep.subr.bf16.mxu1 %v4040_v18 }
 0x428   : > { %935 = vadd.xlane.f32.xlu0 %v934_v46 }
 0x42a   : > { %3398 = vmatpush3.bf16.msra.mxu0 %v3605_v59  ;;  %938 = vadd.xlane.f32.xlu1 %v937_v6 }
 0x42d   : > { %3603 = vmatpush3.bf16.xpose.msk.msra.mxu1 %vm4186_vm3, %v3601_v0 }
 0x42e   : > { %3604 = vmatprep.subr.bf16.mxu1 %v4040_v18 }
 0x435   : > { %3607 = vmatpush3.bf16.xpose.msk.msra.mxu1 %vm4186_vm3, %v3605_v59 }
 0x43c   : > { %3389 = vmatmul.mubr.msk.f32.vlgmr.msra.gmra.mrb[2].mxu1 %vm443_vm2, %v903_v53 }
 0x4a9   : > { %v918_v8 = vpop.xlane.xlu0 %917 }
 0x4ab   : > { %v921_v7 = vpop.xlane.xlu1 %920 }
 0x4ad   : > { %v924_v12 = vpop.xlane.xlu0 %923 }
 0x4af   : > { %v927_v11 = vpop.xlane.xlu1 %926 }
 0x4b1   : > { %v930_v15 = vpop.xlane.xlu0 %929 }
 0x4b3   : > { %v933_v16 = vpop.xlane.xlu1 %932 }
 0x4b5   : > { %v936_v35 = vpop.xlane.xlu0 %935 }
 0x4b7   : > { %v939_v38 = vpop.xlane.xlu1 %938 }
 0x50f   : > { %v1033_v21 = vpop.f32.mrb[2].mxu1 }
 0x510   : > { %v1040_v22 = vrot.slane %v1033_v21, %v4215_v57  ;;  %v3390_v23 = vpop.f32.mrb[3].mxu1 }
 0x512   : > { %v1041_v31 = vadd.f32 %v1040_v22, %v918_v8  ;;  %v1042_v33 = vadd.f32 %v1040_v22, %v921_v7  ;;  %v1043_v34 = vadd.f32 %v1040_v22, %v924_v12  ;;  %v1044_v32 = vadd.f32 %v1040_v22, %v927_v11 }
 0x513   : > { %v1045_v36 = vadd.f32 %v1040_v22, %v930_v15  ;;  %v1046_v37 = vadd.f32 %v1040_v22, %v933_v16  ;;  %v1047_v45 = vadd.f32 %v1040_v22, %v936_v35  ;;  %v1048_v54 = vadd.f32 %v1040_v22, %v939_v38 }
 0x514   : > { %v1049_v39 = vmul.f32 0.2, %v1041_v31  ;;  %v1050_v42 = vmul.f32 0.2, %v1042_v33  ;;  %v1051_v43 = vmul.f32 0.2, %v1043_v34 }
 0x515   : > { %v1052_v47 = vmul.f32 0.2, %v1044_v32  ;;  %v1053_v51 = vmul.f32 0.2, %v1045_v36  ;;  %v1054_v52 = vmul.f32 0.2, %v1046_v37 }
 0x516   : > { %v1057_v56 = vmax.f32 %v1041_v31, %v1049_v39  ;;  %v1058_v58 = vmax.f32 %v1042_v33, %v1050_v42  ;;  %v1059_v59 = vmax.f32 %v1043_v34, %v1051_v43  ;;  %v1055_v46 = vmul.f32 0.2, %v1047_v45 }
 0x517   : > { %v1060_v61 = vmax.f32 %v1044_v32, %v1052_v47  ;;  %v1061_v1 = vmax.f32 %v1045_v36, %v1053_v51  ;;  %v1062_v60 = vmax.f32 %v1046_v37, %v1054_v52  ;;  %v1056_v6 = vmul.f32 0.2, %v1048_v54 }
 0x518   : > { %v1065_v63 = vadd.f32 %v1057_v56, %v4226_v4  ;;  %v1066_v0 = vadd.f32 %v1058_v58, %v4229_v5  ;;  %v1067_v8 = vadd.f32 %v1059_v59, %v4232_v26  ;;  %v1063_v15 = vmax.f32 %v1047_v45, %v1055_v46 }
 0x519   : > { %v1068_v11 = vadd.f32 %v1060_v61, %v4235_v27  ;;  %v1069_v12 = vadd.f32 %v1061_v1, %v4244_v40  ;;  %v1070_v16 = vadd.f32 %v1062_v60, %v4247_v41  ;;  %v1064_v21 = vmax.f32 %v1048_v54, %v1056_v6 }
 0x51a   : > { %v1073_v53 = vsel %vm601_vm4, %v1065_v63, -inf  ;;  %v1076_v7 = vsel %vm601_vm4, %v1066_v0, -inf  ;;  %v1079_v4 = vsel %vm601_vm4, %v1067_v8, -inf  ;;  %v1071_v27 = vadd.f32 %v1063_v15, %v4254_v48 }
 0x51b   : > { %1074 = vmax.xlane.f32.xlu0 %v1073_v53  ;;  %1077 = vmax.xlane.f32.xlu1 %v1076_v7  ;;  %v1082_v5 = vsel %vm601_vm4, %v1068_v11, -inf  ;;  %v1085_v22 = vsel %vm601_vm4, %v1069_v12, -inf  ;;  %v1088_v26 = vsel %vm601_vm4, %v1070_v16, -inf  ;;  %v1072_v23 = vadd.f32 %v1064_v21, %v4257_v49 }
 0x51c   : > { %v1091_v40 = vsel %vm601_vm4, %v1071_v27, -inf }
 0x51d   : > { %v1094_v31 = vsel %vm601_vm4, %v1072_v23, -inf }
 0x51f   : > { %1080 = vmax.xlane.f32.xlu0 %v1079_v4  ;;  %1083 = vmax.xlane.f32.xlu1 %v1082_v5 }
 0x523   : > { %1086 = vmax.xlane.f32.xlu0 %v1085_v22  ;;  %1089 = vmax.xlane.f32.xlu1 %v1088_v26 }
 0x527   : > { %1092 = vmax.xlane.f32.xlu0 %v1091_v40  ;;  %1095 = vmax.xlane.f32.xlu1 %v1094_v31 }
 0x5a8   : > { %v1075_v41 = vpop.xlane.xlu0 %1074  ;;  %v1078_v33 = vpop.xlane.xlu1 %1077 }
 0x5a9   : > { %v1097_v34 = vsub.f32 %v1065_v63, %v1075_v41  ;;  %v1098_v32 = vsub.f32 %v1066_v0, %v1078_v33 }
 0x5ab   : > { %v1105_v35 = vmul.f32 1.442695, %v1097_v34  ;;  %v1107_v36 = vmul.f32 1.442695, %v1098_v32 }
 0x5ac   : > { %v1081_v37 = vpop.xlane.xlu0 %1080  ;;  %v1084_v38 = vpop.xlane.xlu1 %1083 }
 0x5ad   : > { %3768 = vpow2.f32 %v1105_v35  ;;  %v1099_v48 = vsub.f32 %v1067_v8, %v1081_v37  ;;  %v1100_v39 = vsub.f32 %v1068_v11, %v1084_v38 }
 0x5ae   : > { %3770 = vpow2.f32 %v1107_v36 }
 0x5af   : > { %v1109_v49 = vmul.f32 1.442695, %v1099_v48  ;;  %v1111_v42 = vmul.f32 1.442695, %v1100_v39 }
 0x5b0   : > { %v1087_v43 = vpop.xlane.xlu0 %1086  ;;  %v1090_v45 = vpop.xlane.xlu1 %1089 }
 0x5b1   : > { %3772 = vpow2.f32 %v1109_v49  ;;  %v1101_v47 = vsub.f32 %v1069_v12, %v1087_v43  ;;  %v1102_v51 = vsub.f32 %v1070_v16, %v1090_v45 }
 0x5b2   : > { %3774 = vpow2.f32 %v1111_v42 }
 0x5b3   : > { %v1113_v52 = vmul.f32 1.442695, %v1101_v47  ;;  %v1115_v54 = vmul.f32 1.442695, %v1102_v51  ;;  %v3097_v51 = vld [vmem:[%s4928_s2 + $0x50] sm:$0xff] }
 0x5b4   : > { %v1093_v56 = vpop.xlane.xlu0 %1092  ;;  %v1096_v58 = vpop.xlane.xlu1 %1095 }
 0x5b5   : > { %3776 = vpow2.f32 %v1113_v52  ;;  %v1103_v59 = vsub.f32 %v1071_v27, %v1093_v56  ;;  %v1104_v61 = vsub.f32 %v1072_v23, %v1096_v58  ;;  %v3095_v27 = vld [vmem:[%s4928_s2 + $0x40] sm:$0xff]  ;;  %v3096_v23 = vld [vmem:[%s4928_s2 + $0x48] sm:$0xff]  ;;  %v3098_v52 = vld [vmem:[%s4928_s2 + $0x58] sm:$0xff] }
 0x5b6   : > { %3778 = vpow2.f32 %v1115_v54  ;;  %v1460_v40 = vpack.c.bf16 %v3096_v23, %v3095_v27 }
 0x5b7   : > { %v3769_v63 = vpop.eup %3768  ;;  %v1117_v0 = vmul.f32 1.442695, %v1103_v59  ;;  %v1119_v1 = vmul.f32 1.442695, %v1104_v61  ;;  %v1461_v59 = vpack.c.bf16 %v3098_v52, %v3097_v51 }
 0x5b8   : > { %v3771_v60 = vpop.eup %3770  ;;  %v1121_v46 = vsel %vm601_vm4, %v3769_v63, 0.0  ;;  %3427 = vmatprep.subr.bf16.mxu0 %v1460_v40 }
 0x5b9   : > { %3780 = vpow2.f32 %v1117_v0  ;;  %1122 = vadd.xlane.f32.xlu0 %v1121_v46  ;;  %v1124_v6 = vsel %vm601_vm4, %v3771_v60, 0.0 }
 0x5ba   : > { %3782 = vpow2.f32 %v1119_v1  ;;  %1125 = vadd.xlane.f32.xlu1 %v1124_v6 }
 0x5bb   : > { %v3773_v53 = vpop.eup %3772 }
 0x5bc   : > { %v3775_v7 = vpop.eup %3774  ;;  %v1127_v8 = vsel %vm601_vm4, %v3773_v53, 0.0 }
 0x5bd   : > { %1128 = vadd.xlane.f32.xlu0 %v1127_v8  ;;  %v1130_v11 = vsel %vm601_vm4, %v3775_v7, 0.0  ;;  %v1294_v8 = vld [vmem:[%s4931_s5 + $0x10] sm:$0xff] }
 0x5be   : > { %1131 = vadd.xlane.f32.xlu1 %v1130_v11  ;;  %v1295_v11 = vld [vmem:[%s4931_s5 + $0x18] sm:$0xff] }
 0x5bf   : > { %v3777_v12 = vpop.eup %3776 }
 0x5c0   : > { %v3779_v15 = vpop.eup %3778  ;;  %v1133_v4 = vsel %vm601_vm4, %v3777_v12, 0.0 }
 0x5c1   : > { %1134 = vadd.xlane.f32.xlu0 %v1133_v4  ;;  %v1136_v5 = vsel %vm601_vm4, %v3779_v15, 0.0  ;;  %v824_v4 = vld [vmem:[%s4931_s5 + $0x8] sm:$0xff] }
 0x5c2   : > { %1137 = vadd.xlane.f32.xlu1 %v1136_v5 }
 0x5c3   : > { %v3781_v16 = vpop.eup %3780 }
 0x5c4   : > { %v3783_v21 = vpop.eup %3782  ;;  %v1139_v22 = vsel %vm601_vm4, %v3781_v16, 0.0 }
 0x5c5   : > { %1140 = vadd.xlane.f32.xlu0 %v1139_v22  ;;  %v1142_v26 = vsel %vm601_vm4, %v3783_v21, 0.0 }
 0x5c6   : > { %1143 = vadd.xlane.f32.xlu1 %v1142_v26 }
 0x646   : > { %v1123_v31 = vpop.xlane.xlu0 %1122 }
 0x647   : > { %3784 = vrcp.f32 %v1123_v31  ;;  %v1126_v41 = vpop.xlane.xlu1 %1125 }
 0x648   : > { %3786 = vrcp.f32 %v1126_v41 }
 0x64a   : > { %v1129_v33 = vpop.xlane.xlu0 %1128 }
 0x64b   : > { %3788 = vrcp.f32 %v1129_v33  ;;  %v1132_v34 = vpop.xlane.xlu1 %1131 }
 0x64c   : > { %3790 = vrcp.f32 %v1132_v34 }
 0x64e   : > { %v1135_v32 = vpop.xlane.xlu0 %1134 }
 0x64f   : > { %3792 = vrcp.f32 %v1135_v32  ;;  %v1138_v35 = vpop.xlane.xlu1 %1137 }
 0x650   : > { %3794 = vrcp.f32 %v1138_v35 }
 0x651   : > { %v3785_v36 = vpop.eup %3784 }
 0x652   : > { %v3787_v37 = vpop.eup %3786  ;;  %v1141_v38 = vpop.xlane.xlu0 %1140  ;;  %v1153_v48 = vmul.f32 %v3785_v36, %v3769_v63 }
 0x653   : > { %3796 = vrcp.f32 %v1141_v38  ;;  %v1144_v39 = vpop.xlane.xlu1 %1143  ;;  %v1154_v49 = vmul.f32 %v3787_v37, %v3771_v60 }
 0x654   : > { %3798 = vrcp.f32 %v1144_v39 }
 0x655   : > { %v3789_v42 = vpop.eup %3788  ;;  %v1161_v43 = vpack.c.bf16 %v1154_v49, %v1153_v48 }
 0x656   : > { %v3791_v45 = vpop.eup %3790  ;;  %v1155_v47 = vmul.f32 %v3789_v42, %v3773_v53 }
 0x657   : > { %v1156_v54 = vmul.f32 %v3791_v45, %v3775_v7  ;;  %3399 = vmatprep.mubr.msk.bf16.mxu0 %vm601_vm4, %v1161_v43 }
 0x659   : > { %v3793_v56 = vpop.eup %3792  ;;  %v1162_v58 = vpack.c.bf16 %v1156_v54, %v1155_v47  ;;  %v4468_v54 = vld [vmem:[%s4929_s3 + $0x2] ss:$0 sm:$0xff] }
 0x65a   : > { %v3795_v61 = vpop.eup %3794  ;;  %v1157_v63 = vmul.f32 %v3793_v56, %v3777_v12  ;;  %v1296_v12 = vpack.c.bf16 %v1295_v11, %v1294_v8 }
 0x65b   : > { %3400 = vmatmul.mubr.msk.bf16.vlgmr.msra.gmra.mrb[24].mxu0 %vm601_vm4, %v1162_v58  ;;  %v1158_v0 = vmul.f32 %v3795_v61, %v3779_v15  ;;  %v823_v15 = vld [vmem:[%s4931_s5] sm:$0xff] }
 0x65c   : > { %3428 = vmatpush3.bf16.msra.mxu0 %v1460_v40  ;;  %3407 = vmatprep.subr.bf16.mxu1 %v1296_v12  ;;  %v4450_v5 = vpack.c.bf16 %v824_v4, %v823_v15 }
 0x65d   : > { %v3797_v1 = vpop.eup %3796  ;;  %v1163_v60 = vpack.c.bf16 %v1158_v0, %v1157_v63  ;;  %3429 = vmatprep.subr.bf16.mxu0 %v1461_v59  ;;  %3408 = vmatpush3.bf16.msra.mxu1 %v1296_v12 }
 0x65e   : > { %v3799_v46 = vpop.eup %3798  ;;  %v1159_v6 = vmul.f32 %v3797_v1, %v3781_v16  ;;  %3417 = vmatprep.subr.bf16.mxu1 %v4450_v5 }
 0x65f   : > { %3403 = vmatprep.mubr.msk.bf16.mxu0 %vm601_vm4, %v1163_v60  ;;  %v1160_v53 = vmul.f32 %v3799_v46, %v3783_v21 }
 0x660   : > { %3430 = vmatpush3.bf16.msra.mxu0 %v1461_v59 }
 0x661   : > { %v1164_v7 = vpack.c.bf16 %v1160_v53, %v1159_v6  ;;  %3608 = vmatprep.subr.bf16.mxu0 %v4040_v18 }
 0x663   : > { %3404 = vmatmul.mubr.msk.bf16.gmra.mrb[28].mxu0 %vm601_vm4, %v1164_v7 }
 0x664   : > { %3431 = vmatprep.mubr.msk.bf16.mxu0 %vm351_vm0, %v4161_v9 }
 0x66b   : > { %3432 = vmatmul.mubr.msk.bf16.vlgmr.msra.gmra.mrb[32].mxu0 %vm351_vm0, %v4163_v13 }
 0x66c   : > { %3435 = vmatprep.mubr.msk.bf16.mxu0 %vm351_vm0, %v4165_v14 }
 0x673   : > { %3436 = vmatmul.mubr.msk.bf16.gmra.mrb[36].mxu0 %vm351_vm0, %v4173_v17 }
 0x674   : > { %3455 = vmatprep.mubr.msk.f32.mxu0 %vm4041_vm1, %v4042_v19 }
 0x72e   : > { %v3401_v16 = vpop.f32.mrb[24].mxu0 }
 0x72f   : > { %v1256_v21 = vmin.f32 %v3401_v16, 0.0  ;;  %v1215_v22 = vpop.f32.mrb[25].mxu0  ;;  %vm1248_vm13 = vcmp.gt.f32.partialorder %v3401_v16, 0.0 }
 0x730   : > { %v1254_v26 = vmin.f32 %v1215_v22, 0.0  ;;  %v3402_v27 = vpop.f32.mrb[26].mxu0  ;;  %vm1246_vm14 = vcmp.gt.f32.partialorder %v1215_v22, 0.0 }
 0x731   : > { %v1266_v23 = vmul.f32 1.442695, %v1256_v21  ;;  %v1257_v40 = vmin.f32 %v3402_v27, 0.0  ;;  %v1218_v31 = vpop.f32.mrb[27].mxu0  ;;  %vm1249_vm15 = vcmp.gt.f32.partialorder %v3402_v27, 0.0 }
 0x732   : > { %v1262_v41 = vmul.f32 1.442695, %v1254_v26  ;;  %v1255_v33 = vmin.f32 %v1218_v31, 0.0  ;;  %vm1247_vm5 = vcmp.gt.f32.partialorder %v1218_v31, 0.0 }
 0x733   : > { %3800 = vpow2.f32 %v1266_v23  ;;  %v1268_v34 = vmul.f32 1.442695, %v1257_v40 }
 0x734   : > { %3802 = vpow2.f32 %v1262_v41  ;;  %v1264_v32 = vmul.f32 1.442695, %v1255_v33 }
 0x735   : > { %3804 = vpow2.f32 %v1268_v34 }
 0x736   : > { %3806 = vpow2.f32 %v1264_v32  ;;  %v4453_v35 = vpop.f32.mrb[28].mxu0 }
 0x737   : > { %v1260_v36 = vmin.f32 %v4453_v35, 0.0  ;;  %v4456_v37 = vpop.f32.mrb[29].mxu0  ;;  %vm1252_vm6 = vcmp.gt.f32.partialorder %v4453_v35, 0.0 }
 0x738   : > { %v1258_v38 = vmin.f32 %v4456_v37, 0.0  ;;  %v4459_v48 = vpop.f32.mrb[30].mxu0  ;;  %vm1250_vm7 = vcmp.gt.f32.partialorder %v4456_v37, 0.0 }
 0x739   : > { %v1274_v39 = vmul.f32 1.442695, %v1260_v36  ;;  %v1261_v49 = vmin.f32 %v4459_v48, 0.0  ;;  %v4462_v42 = vpop.f32.mrb[31].mxu0  ;;  %vm1253_vm8 = vcmp.gt.f32.partialorder %v4459_v48, 0.0 }
 0x73a   : > { %v1270_v43 = vmul.f32 1.442695, %v1258_v38  ;;  %v1259_v45 = vmin.f32 %v4462_v42, 0.0  ;;  %vm1251_vm9 = vcmp.gt.f32.partialorder %v4462_v42, 0.0 }
 0x73b   : > { %3808 = vpow2.f32 %v1274_v39  ;;  %v1276_v47 = vmul.f32 1.442695, %v1261_v49 }
 0x73c   : > { %3810 = vpow2.f32 %v1270_v43  ;;  %v1272_v51 = vmul.f32 1.442695, %v1259_v45 }
 0x73d   : > { %v3801_v52 = vpop.eup %3800  ;;  %3812 = vpow2.f32 %v1276_v47 }
 0x73e   : > { %v3803_v56 = vpop.eup %3802  ;;  %v3081_v58 = vadd.f32 -1.0, %v3801_v52  ;;  %3814 = vpow2.f32 %v1272_v51  ;;  %v3433_v59 = vpop.f32.mrb[32].mxu0 }
 0x73f   : > { %v3805_v61 = vpop.eup %3804  ;;  %v3079_v63 = vadd.f32 -1.0, %v3803_v56  ;;  %v1496_v0 = vpop.f32.mrb[33].mxu0  ;;  %v1535_v8 = vmul.f32 %v3433_v59, %v4468_v54 }
 0x740   : > { %v3807_v1 = vpop.eup %3806  ;;  %v3082_v60 = vadd.f32 -1.0, %v3805_v61  ;;  %v1533_v46 = vmul.f32 %v4468_v54, %v1496_v0  ;;  %v3434_v6 = vpop.f32.mrb[34].mxu0  ;;  %v1288_v53 = vsel %vm1248_vm13, %v3401_v16, %v3081_v58 }
 0x741   : > { %v3080_v7 = vadd.f32 -1.0, %v3807_v1  ;;  %v4472_v11 = vpack.c.bf16 %v3434_v6, %v3433_v59  ;;  %v1499_v12 = vpop.f32.mrb[35].mxu0  ;;  %v1286_v23 = vsel %vm1246_vm14, %v1215_v22, %v3079_v63  ;;  %v1536_v16 = vmul.f32 %v3434_v6, %v4468_v54 }
 0x742   : > { %v1289_v15 = vsel %vm1249_vm15, %v3402_v27, %v3082_v60  ;;  %v1534_v4 = vmul.f32 %v4468_v54, %v1499_v12  ;;  %v4475_v21 = vpack.c.bf16 %v1499_v12, %v1496_v0  ;;  %v1541_v26 = vsel %vm443_vm2, %v1533_v46, 0.0 }
 0x743   : > { %v1298_v40 = vpack.c.bf16 %v1289_v15, %v1288_v53  ;;  %v1287_v41 = vsel %vm1247_vm5, %v1218_v31, %v3080_v7  ;;  %1542 = vadd.xlane.f32.xlu0 %v1541_v26  ;;  %v1547_v31 = vsel %vm443_vm2, %v1535_v8, 0.0  ;;  %v1550_v52 = vsel %vm443_vm2, %v1536_v16, 0.0  ;;  %v3130_v8 = vld [vmem:[%s4928_s2 + $0x68] sm:$0xff] }
 0x744   : > { %v1297_v33 = vpack.c.bf16 %v1287_v41, %v1286_v23  ;;  %3611 = vmatpush3.bf16.xpose.msk.msra.mxu0 %vm4186_vm3, %v4475_v21  ;;  %v1544_v27 = vsel %vm443_vm2, %v1534_v4, 0.0 }
 0x745   : > { %v3809_v34 = vpop.eup %3808  ;;  %1545 = vadd.xlane.f32.xlu1 %v1544_v27  ;;  %3612 = vmatprep.subr.bf16.mxu0 %v4040_v18 }
 0x746   : > { %v3811_v32 = vpop.eup %3810  ;;  %v3085_v22 = vadd.f32 -1.0, %v3809_v34  ;;  %3409 = vmatprep.mubr.msk.bf16.mxu1 %vm443_vm2, %v1297_v33  ;;  %v3437_v36 = vpop.f32.mrb[36].mxu0 }
 0x747   : > { %v3813_v38 = vpop.eup %3812  ;;  %v3083_v39 = vadd.f32 -1.0, %v3811_v32  ;;  %3410 = vmatmul.mubr.msk.bf16.vlgmr.msra.gmra.mrb[4].mxu1 %vm443_vm2, %v1298_v40  ;;  %1548 = vadd.xlane.f32.xlu0 %v1547_v31  ;;  %v1512_v49 = vpop.f32.mrb[37].mxu0  ;;  %v1539_v47 = vmul.f32 %v3437_v36, %v4468_v54 }
 0x748   : > { %v3815_v43 = vpop.eup %3814  ;;  %v3086_v45 = vadd.f32 -1.0, %v3813_v38  ;;  %3418 = vmatpush3.bf16.msra.mxu1 %v4450_v5  ;;  %v1537_v51 = vmul.f32 %v4468_v54, %v1512_v49  ;;  %v3438_v56 = vpop.f32.mrb[38].mxu0  ;;  %v1292_v58 = vsel %vm1252_vm6, %v4453_v35, %v3085_v22 }
 0x749   : > { %v3084_v59 = vadd.f32 -1.0, %v3815_v43  ;;  %3458 = vmatprep.subr.bf16.mxu1 %v4475_v21  ;;  %1551 = vadd.xlane.f32.xlu1 %v1550_v52  ;;  %v1540_v61 = vmul.f32 %v3438_v56, %v4468_v54  ;;  %v3621_v63 = vpack.c.bf16 %v3438_v56, %v3437_v36  ;;  %v1515_v0 = vpop.f32.mrb[39].mxu0  ;;  %v1290_v35 = vsel %vm1250_vm7, %v4456_v37, %v3083_v39 }
 0x74a   : > { %v1293_v5 = vsel %vm1253_vm8, %v4459_v48, %v3086_v45  ;;  %v1538_v1 = vmul.f32 %v4468_v54, %v1515_v0  ;;  %v3617_v60 = vpack.c.bf16 %v1515_v0, %v1512_v49  ;;  %v1553_v46 = vsel %vm443_vm2, %v1537_v51, 0.0  ;;  %v4576_v49 = vld [vmem:[%s4223_s23] sm:$0xff]  ;;  %v4582_v45 = vld [vmem:[%s4223_s23 + $0x8] sm:$0xff] }
 0x74b   : > { %v1300_v6 = vpack.c.bf16 %v1293_v5, %v1292_v58  ;;  %v1291_v53 = vsel %vm1251_vm9, %v4462_v42, %v3084_v59  ;;  %1554 = vadd.xlane.f32.xlu0 %v1553_v46  ;;  %v1559_v54 = vsel %vm443_vm2, %v1539_v47, 0.0  ;;  %v1562_v37 = vsel %vm443_vm2, %v1540_v61, 0.0  ;;  %v3129_v42 = vld [vmem:[%s4928_s2 + $0x60] sm:$0xff]  ;;  %v4593_v5 = vld [vmem:[%s4223_s23 + $0x10] sm:$0xff] }
 0x74c   : > { %v1299_v7 = vpack.c.bf16 %v1291_v53, %v1290_v35  ;;  %3615 = vmatpush3.bf16.xpose.msk.msra.mxu0 %vm4186_vm3, %v4472_v11  ;;  %v1556_v48 = vsel %vm443_vm2, %v1538_v1, 0.0  ;;  %v2016_v24 = vpack.c.bf16 %v3130_v8, %v3129_v42  ;;  %v4617_v8 = vld [vmem:[%s4223_s23 + $0x28] sm:$0xff] }
 0x74d   : > { %1557 = vadd.xlane.f32.xlu1 %v1556_v48  ;;  %3616 = vmatprep.subr.bf16.mxu0 %v4040_v18 }
 0x74e   : > { %3413 = vmatprep.mubr.msk.bf16.mxu1 %vm443_vm2, %v1299_v7 }
 0x74f   : > { %3414 = vmatmul.mubr.msk.bf16.gmra.mrb[8].mxu1 %vm443_vm2, %v1300_v6  ;;  %1560 = vadd.xlane.f32.xlu0 %v1559_v54  ;;  %v4603_v6 = vld [vmem:[%s4223_s23 + $0x20] sm:$0xff] }
 0x750   : > { %3419 = vmatprep.mubr.msk.bf16.mxu1 %vm443_vm2, %v826_v29 }
 0x751   : > { %1563 = vadd.xlane.f32.xlu1 %v1562_v37 }
 0x754   : > { %3619 = vmatpush3.bf16.xpose.msk.msra.mxu0 %vm4186_vm3, %v3617_v60 }
 0x755   : > { %3620 = vmatprep.subr.bf16.mxu0 %v4040_v18 }
 0x757   : > { %3420 = vmatmul.mubr.msk.bf16.vlgmr.msra.gmra.mrb[4].mxu1 %vm443_vm2, %v827_v25  ;;  %v1528_v25 = vld [vmem:[%s4930_s4 + $0x2] sm:$0x1] }
 0x758   : > { %3459 = vmatpush3.bf16.msra.mxu1 %v4475_v21  ;;  %3423 = vmatprep.mubr.msk.bf16.mxu1 %vm443_vm2, %v828_v50 }
 0x759   : > { %3460 = vmatprep.subr.bf16.mxu1 %v4472_v11 }
 0x75c   : > { %3461 = vmatpush3.bf16.msra.mxu1 %v4472_v11  ;;  %3623 = vmatpush3.bf16.xpose.msk.msra.mxu0 %vm4186_vm3, %v3621_v63 }
 0x75d   : > { %3462 = vmatprep.subr.bf16.mxu1 %v3617_v60  ;;  %3484 = vmatprep.subr.bf16.mxu0 %v2016_v24 }
 0x75f   : > { %3424 = vmatmul.mubr.msk.bf16.gmra.mrb[8].mxu1 %vm443_vm2, %v829_v2 }
 0x760   : > { %3463 = vmatpush3.bf16.msra.mxu1 %v3617_v60  ;;  %v4597_v60 = vld [vmem:[%s4223_s23 + $0x18] sm:$0xff] }
 0x761   : > { %3464 = vmatprep.subr.bf16.mxu1 %v3621_v63 }
 0x763   : > { %3456 = vmatmul.mubr.msk.f32.vlgmr.msra.gmra.mrb[40].mxu0 %vm443_vm2, %v1528_v25 }
 0x764   : > { %3465 = vmatpush3.bf16.msra.mxu1 %v3621_v63  ;;  %3485 = vmatpush3.bf16.msra.mxu0 %v2016_v24 }
 0x765   : > { %3486 = vmatprep.subr.bf16.mxu0 %v2017_v28  ;;  %3488 = vmatprep.mubr.msk.bf16.mxu0 %vm351_vm0, %v4161_v9 }
 0x768   : > { %3487 = vmatpush3.bf16.msra.mxu0 %v2017_v28  ;;  %v4628_v28 = vld [vmem:[%s4223_s23 + $0x30] sm:$0xff] }
 0x769   : > { %3624 = vmatprep.subr.bf16.mxu0 %v4040_v18 }
 0x76b   : > { %3489 = vmatmul.mubr.msk.bf16.vlgmr.msra.gmra.mrb[44].mxu0 %vm351_vm0, %v4163_v13 }
 0x76c   : > { %3492 = vmatprep.mubr.msk.bf16.mxu0 %vm351_vm0, %v4165_v14 }
 0x773   : > { %3493 = vmatmul.mubr.msk.bf16.gmra.mrb[48].mxu0 %vm351_vm0, %v4173_v17 }
 0x774   : > { %3512 = vmatprep.mubr.msk.f32.mxu0 %vm4041_vm1, %v4042_v19 }
 0x7d0   : > { %v1543_v55 = vpop.xlane.xlu0 %1542 }
 0x7d2   : > { %v1546_v29 = vpop.xlane.xlu1 %1545 }
 0x7d4   : > { %v1549_v44 = vpop.xlane.xlu0 %1548 }
 0x7d6   : > { %v1552_v62 = vpop.xlane.xlu1 %1551 }
 0x7d8   : > { %v1555_v9 = vpop.xlane.xlu0 %1554 }
 0x7da   : > { %v1558_v2 = vpop.xlane.xlu1 %1557 }
 0x7dc   : > { %v1561_v4 = vpop.xlane.xlu0 %1560 }
 0x7de   : > { %v1564_v26 = vpop.xlane.xlu1 %1563 }
 0x836   : > { %v1658_v3 = vpop.f32.mrb[40].mxu0 }
 0x837   : > { %v1665_v50 = vrot.slane %v1658_v3, %v4215_v57  ;;  %v3457_v11 = vpop.f32.mrb[41].mxu0 }
 0x839   : > { %v1666_v13 = vadd.f32 %v1665_v50, %v1543_v55  ;;  %v1667_v12 = vadd.f32 %v1665_v50, %v1546_v29  ;;  %v1668_v15 = vadd.f32 %v1665_v50, %v1549_v44  ;;  %v1669_v14 = vadd.f32 %v1665_v50, %v1552_v62 }
 0x83a   : > { %v1670_v21 = vadd.f32 %v1665_v50, %v1555_v9  ;;  %v1671_v17 = vadd.f32 %v1665_v50, %v1558_v2  ;;  %v1672_v33 = vadd.f32 %v1665_v50, %v1561_v4  ;;  %v1673_v32 = vadd.f32 %v1665_v50, %v1564_v26  ;;  %v4637_v9 = vld [vmem:[%s4223_s23 + $0x38] sm:$0xff] }
 0x83b   : > { %v1674_v23 = vmul.f32 0.2, %v1666_v13  ;;  %v1675_v40 = vmul.f32 0.2, %v1667_v12  ;;  %v1676_v41 = vmul.f32 0.2, %v1668_v15 }
 0x83c   : > { %v1677_v16 = vmul.f32 0.2, %v1669_v14  ;;  %v1678_v27 = vmul.f32 0.2, %v1670_v21  ;;  %v1679_v34 = vmul.f32 0.2, %v1671_v17 }
 0x83d   : > { %v1682_v22 = vmax.f32 %v1666_v13, %v1674_v23  ;;  %v1683_v31 = vmax.f32 %v1667_v12, %v1675_v40  ;;  %v1684_v36 = vmax.f32 %v1668_v15, %v1676_v41  ;;  %v1680_v58 = vmul.f32 0.2, %v1672_v33  ;;  %v2084_v15 = vld [vmem:[%s4930_s4 + $0x3] sm:$0x1] }
 0x83e   : > { %v1685_v38 = vmax.f32 %v1669_v14, %v1677_v16  ;;  %v4573_v39 = vpop.f32.mrb[44].mxu0  ;;  %v1686_v52 = vmax.f32 %v1670_v21, %v1678_v27  ;;  %v1687_v56 = vmax.f32 %v1671_v17, %v1679_v34  ;;  %v1681_v59 = vmul.f32 0.2, %v1673_v32 }
 0x83f   : > { %v4579_v43 = vadd.f32 %v4576_v49, %v1682_v22  ;;  %v1691_v47 = vadd.f32 %v4582_v45, %v1683_v31  ;;  %v4585_v51 = vpop.f32.mrb[45].mxu0  ;;  %v1692_v1 = vadd.f32 %v4593_v5, %v1684_v36  ;;  %v1688_v7 = vmax.f32 %v1672_v33, %v1680_v58 }
 0x840   : > { %v4587_v61 = vpop.f32.mrb[46].mxu0  ;;  %v1693_v46 = vadd.f32 %v4597_v60, %v1685_v38  ;;  %v1694_v53 = vadd.f32 %v4603_v6, %v1686_v52  ;;  %v1695_v24 = vadd.f32 %v4617_v8, %v1687_v56  ;;  %v1689_v10 = vmax.f32 %v1673_v32, %v1681_v59 }
 0x841   : > { %v1698_v63 = vsel %vm601_vm4, %v4579_v43, -inf  ;;  %v1701_v0 = vsel %vm601_vm4, %v1691_v47, -inf  ;;  %v4600_v35 = vpop.f32.mrb[47].mxu0  ;;  %v4608_v48 = vpack.c.bf16 %v4587_v61, %v4573_v39  ;;  %v1704_v37 = vsel %vm601_vm4, %v1692_v1, -inf }
 0x842   : > { %1699 = vmax.xlane.f32.xlu0 %v1698_v63  ;;  %1702 = vmax.xlane.f32.xlu1 %v1701_v0  ;;  %v4612_v54 = vpack.c.bf16 %v4600_v35, %v4585_v51  ;;  %v1707_v42 = vsel %vm601_vm4, %v1693_v46, -inf  ;;  %v1696_v29 = vadd.f32 %v4628_v28, %v1688_v7  ;;  %v1710_v62 = vsel %vm601_vm4, %v1694_v53, -inf }
 0x843   : > { %v1713_v44 = vsel %vm601_vm4, %v1695_v24, -inf  ;;  %v1697_v2 = vadd.f32 %v4637_v9, %v1689_v10 }
 0x844   : > { %3627 = vmatpush3.bf16.xpose.msk.msra.mxu0 %vm4186_vm3, %v4612_v54  ;;  %v1716_v13 = vsel %vm601_vm4, %v1696_v29, -inf }
 0x845   : > { %3628 = vmatprep.subr.bf16.mxu0 %v4040_v18  ;;  %v1719_v12 = vsel %vm601_vm4, %v1697_v2, -inf }
 0x846   : > { %1705 = vmax.xlane.f32.xlu0 %v1704_v37  ;;  %1708 = vmax.xlane.f32.xlu1 %v1707_v42  ;;  %v4620_v20 = vpop.f32.mrb[48].mxu0 }
 0x847   : > { %v4625_v25 = vpop.f32.mrb[49].mxu0 }
 0x848   : > { %v4632_v55 = vpop.f32.mrb[50].mxu0 }
 0x849   : > { %v4642_v3 = vpack.c.bf16 %v4632_v55, %v4620_v20  ;;  %v4644_v50 = vpop.f32.mrb[51].mxu0 }
 0x84a   : > { %1711 = vmax.xlane.f32.xlu0 %v1710_v62  ;;  %1714 = vmax.xlane.f32.xlu1 %v1713_v44  ;;  %v4648_v11 = vpack.c.bf16 %v4644_v50, %v4625_v25 }
 0x84c   : > { %3631 = vmatpush3.bf16.xpose.msk.msra.mxu0 %vm4186_vm3, %v4608_v48 }
 0x84d   : > { %3632 = vmatprep.subr.bf16.mxu0 %v4040_v18 }
 0x84e   : > { %1717 = vmax.xlane.f32.xlu0 %v1716_v13  ;;  %1720 = vmax.xlane.f32.xlu1 %v1719_v12 }
 0x854   : > { %3635 = vmatpush3.bf16.xpose.msk.msra.mxu0 %vm4186_vm3, %v4648_v11 }
 0x855   : > { %3636 = vmatprep.subr.bf16.mxu0 %v4040_v18 }
 0x85c   : > { %3639 = vmatpush3.bf16.xpose.msk.msra.mxu0 %vm4186_vm3, %v4642_v3 }
 0x85d   : > { %3640 = vmatprep.subr.bf16.mxu0 %v4040_v18 }
 0x863   : > { %3513 = vmatmul.mubr.msk.f32.vlgmr.msra.gmra.mrb[42].mxu0 %vm443_vm2, %v2084_v15 }
 0x864   : > { %3557 = vmatprep.mubr.msk.f32.mxu0 %vm4041_vm1, %v4042_v19 }
 0x8cf   : > { %v1700_v14 = vpop.xlane.xlu0 %1699  ;;  %v1703_v4 = vpop.xlane.xlu1 %1702 }
 0x8d0   : > { %v1722_v21 = vsub.f32 %v4579_v43, %v1700_v14  ;;  %v1723_v17 = vsub.f32 %v1691_v47, %v1703_v4 }
 0x8d2   : > { %v1730_v26 = vmul.f32 1.442695, %v1722_v21  ;;  %v1732_v23 = vmul.f32 1.442695, %v1723_v17 }
 0x8d3   : > { %v1706_v30 = vpop.xlane.xlu0 %1705  ;;  %v1709_v40 = vpop.xlane.xlu1 %1708 }
 0x8d4   : > { %3816 = vpow2.f32 %v1730_v26  ;;  %v1724_v41 = vsub.f32 %v1692_v1, %v1706_v30  ;;  %v1725_v33 = vsub.f32 %v1693_v46, %v1709_v40 }
 0x8d5   : > { %3818 = vpow2.f32 %v1732_v23 }
 0x8d6   : > { %v1734_v16 = vmul.f32 1.442695, %v1724_v41  ;;  %v1736_v27 = vmul.f32 1.442695, %v1725_v33 }
 0x8d7   : > { %v1712_v34 = vpop.xlane.xlu0 %1711  ;;  %v1715_v32 = vpop.xlane.xlu1 %1714 }
 0x8d8   : > { %3820 = vpow2.f32 %v1734_v16  ;;  %v1726_v22 = vsub.f32 %v1694_v53, %v1712_v34  ;;  %v1727_v19 = vsub.f32 %v1695_v24, %v1715_v32 }
 0x8d9   : > { %3822 = vpow2.f32 %v1736_v27 }
 0x8da   : > { %v1738_v31 = vmul.f32 1.442695, %v1726_v22  ;;  %v1740_v36 = vmul.f32 1.442695, %v1727_v19 }
 0x8db   : > { %v1718_v38 = vpop.xlane.xlu0 %1717  ;;  %v1721_v43 = vpop.xlane.xlu1 %1720 }
 0x8dc   : > { %3824 = vpow2.f32 %v1738_v31  ;;  %v1728_v47 = vsub.f32 %v1696_v29, %v1718_v38  ;;  %v1729_v52 = vsub.f32 %v1697_v2, %v1721_v43  ;;  %v3137_v29 = vld [vmem:[%s4929_s3 + $0x3] ss:$0 sm:$0xff] }
 0x8dd   : > { %3826 = vpow2.f32 %v1740_v36  ;;  %v2089_v13 = vmul.f32 %v3137_v29, %v4585_v51  ;;  %v2090_v15 = vmul.f32 %v3137_v29, %v4600_v35  ;;  %v2091_v4 = vmul.f32 %v4573_v39, %v3137_v29 }
 0x8de   : > { %v4671_v56 = vpop.eup %3816  ;;  %v1742_v58 = vmul.f32 1.442695, %v1728_v47  ;;  %v1744_v59 = vmul.f32 1.442695, %v1729_v52  ;;  %v2092_v17 = vmul.f32 %v4587_v61, %v3137_v29  ;;  %v2093_v51 = vmul.f32 %v3137_v29, %v4625_v25 }
 0x8df   : > { %v4673_v63 = vpop.eup %3818  ;;  %v1746_v0 = vsel %vm601_vm4, %v4671_v56, 0.0  ;;  %v2097_v21 = vsel %vm443_vm2, %v2089_v13, 0.0  ;;  %v2100_v26 = vsel %vm443_vm2, %v2090_v15, 0.0  ;;  %v2103_v23 = vsel %vm443_vm2, %v2091_v4, 0.0 }
 0x8e0   : > { %3828 = vpow2.f32 %v1742_v58  ;;  %1747 = vadd.xlane.f32.xlu0 %v1746_v0  ;;  %v1749_v1 = vsel %vm601_vm4, %v4673_v63, 0.0  ;;  %v2094_v35 = vmul.f32 %v3137_v29, %v4644_v50  ;;  %v2106_v30 = vsel %vm443_vm2, %v2092_v17, 0.0  ;;  %v1919_v50 = vld [vmem:[%s4931_s5 + $0x20] sm:$0xff] }
 0x8e1   : > { %3830 = vpow2.f32 %v1744_v59  ;;  %1750 = vadd.xlane.f32.xlu1 %v1749_v1  ;;  %v2095_v39 = vmul.f32 %v4620_v20, %v3137_v29  ;;  %v2109_v40 = vsel %vm443_vm2, %v2093_v51, 0.0  ;;  %v2096_v61 = vmul.f32 %v4632_v55, %v3137_v29  ;;  %v1920_v20 = vld [vmem:[%s4931_s5 + $0x28] sm:$0xff] }
 0x8e2   : > { %v4679_v46 = vpop.eup %3820  ;;  %v2112_v41 = vsel %vm443_vm2, %v2094_v35, 0.0  ;;  %v1921_v16 = vpack.c.bf16 %v1920_v20, %v1919_v50 }
 0x8e3   : > { %v4681_v53 = vpop.eup %3822  ;;  %v1752_v7 = vsel %vm601_vm4, %v4679_v46, 0.0  ;;  %v2115_v25 = vsel %vm443_vm2, %v2095_v39, 0.0  ;;  %v2118_v33 = vsel %vm443_vm2, %v2096_v61, 0.0 }
 0x8e4   : > { %1753 = vadd.xlane.f32.xlu0 %v1752_v7  ;;  %v1755_v37 = vsel %vm601_vm4, %v4681_v53, 0.0  ;;  %3474 = vmatprep.subr.bf16.mxu1 %v1921_v16 }
 0x8e5   : > { %1756 = vadd.xlane.f32.xlu1 %v1755_v37 }
 0x8e6   : > { %v4687_v42 = vpop.eup %3824 }
 0x8e7   : > { %v4689_v24 = vpop.eup %3826  ;;  %v1758_v10 = vsel %vm601_vm4, %v4687_v42, 0.0 }
 0x8e8   : > { %1759 = vadd.xlane.f32.xlu0 %v1758_v10  ;;  %v1761_v62 = vsel %vm601_vm4, %v4689_v24, 0.0 }
 0x8e9   : > { %1762 = vadd.xlane.f32.xlu1 %v1761_v62 }
 0x8ea   : > { %v4698_v44 = vpop.eup %3828 }
 0x8eb   : > { %v4700_v2 = vpop.eup %3830  ;;  %v1764_v12 = vsel %vm601_vm4, %v4698_v44, 0.0 }
 0x8ec   : > { %1765 = vadd.xlane.f32.xlu0 %v1764_v12  ;;  %v1767_v14 = vsel %vm601_vm4, %v4700_v2, 0.0 }
 0x8ed   : > { %1768 = vadd.xlane.f32.xlu1 %v1767_v14 }
 0x8f0   : > { %2098 = vadd.xlane.f32.xlu0 %v2097_v21 }
 0x8f1   : > { %2101 = vadd.xlane.f32.xlu1 %v2100_v26 }
 0x8f4   : > { %2104 = vadd.xlane.f32.xlu0 %v2103_v23 }
 0x8f5   : > { %2107 = vadd.xlane.f32.xlu1 %v2106_v30 }
 0x8f8   : > { %2110 = vadd.xlane.f32.xlu0 %v2109_v40 }
 0x8f9   : > { %2113 = vadd.xlane.f32.xlu1 %v2112_v41 }
 0x8fc   : > { %2116 = vadd.xlane.f32.xlu0 %v2115_v25 }
 0x8fd   : > { %2119 = vadd.xlane.f32.xlu1 %v2118_v33 }
 0x936   : > { %v2214_v55 = vpop.f32.mrb[42].mxu0 }
 0x937   : > { %v3514_v27 = vpop.f32.mrb[43].mxu0  ;;  %v2221_v59 = vrot.slane %v2214_v55, %v4215_v57 }
 0x96d   : > { %v1748_v34 = vpop.xlane.xlu0 %1747 }
 0x96e   : > { %3832 = vrcp.f32 %v1748_v34  ;;  %v1751_v32 = vpop.xlane.xlu1 %1750 }
 0x96f   : > { %3834 = vrcp.f32 %v1751_v32 }
 0x971   : > { %v1754_v22 = vpop.xlane.xlu0 %1753 }
 0x972   : > { %3836 = vrcp.f32 %v1754_v22  ;;  %v1757_v19 = vpop.xlane.xlu1 %1756 }
 0x973   : > { %3838 = vrcp.f32 %v1757_v19 }
 0x975   : > { %v1760_v31 = vpop.xlane.xlu0 %1759 }
 0x976   : > { %3840 = vrcp.f32 %v1760_v31  ;;  %v1763_v36 = vpop.xlane.xlu1 %1762 }
 0x977   : > { %3842 = vrcp.f32 %v1763_v36 }
 0x978   : > { %v3833_v38 = vpop.eup %3832 }
 0x979   : > { %v3835_v43 = vpop.eup %3834  ;;  %v1766_v47 = vpop.xlane.xlu0 %1765  ;;  %v1778_v52 = vmul.f32 %v3833_v38, %v4671_v56 }
 0x97a   : > { %3844 = vrcp.f32 %v1766_v47  ;;  %v1769_v58 = vpop.xlane.xlu1 %1768  ;;  %v1779_v0 = vmul.f32 %v3835_v43, %v4673_v63 }
 0x97b   : > { %3846 = vrcp.f32 %v1769_v58 }
 0x97c   : > { %v3837_v1 = vpop.eup %3836  ;;  %v1786_v7 = vpack.c.bf16 %v1779_v0, %v1778_v52 }
 0x97d   : > { %v3839_v37 = vpop.eup %3838  ;;  %v1780_v10 = vmul.f32 %v3837_v1, %v4679_v46  ;;  %v2099_v29 = vpop.xlane.xlu0 %2098 }
 0x97e   : > { %v1781_v62 = vmul.f32 %v3839_v37, %v4681_v53  ;;  %v2222_v13 = vadd.f32 %v2221_v59, %v2099_v29  ;;  %v2102_v12 = vpop.xlane.xlu1 %2101  ;;  %3466 = vmatprep.mubr.msk.bf16.mxu1 %vm601_vm4, %v1786_v7 }
 0x97f   : > { %v2223_v56 = vadd.f32 %v2221_v59, %v2102_v12 }
 0x980   : > { %v3841_v15 = vpop.eup %3840  ;;  %v1787_v14 = vpack.c.bf16 %v1781_v62, %v1780_v10  ;;  %v2230_v4 = vmul.f32 0.2, %v2222_v13 }
 0x981   : > { %v3843_v21 = vpop.eup %3842  ;;  %v2231_v17 = vmul.f32 0.2, %v2223_v56  ;;  %v2105_v63 = vpop.xlane.xlu0 %2104  ;;  %v1782_v26 = vmul.f32 %v3841_v15, %v4687_v42 }
 0x982   : > { %v2238_v51 = vmax.f32 %v2222_v13, %v2230_v4  ;;  %v2224_v23 = vadd.f32 %v2221_v59, %v2105_v63  ;;  %v2108_v35 = vpop.xlane.xlu1 %2107  ;;  %3467 = vmatmul.mubr.msk.bf16.vlgmr.msra.gmra.mrb[12].mxu1 %vm601_vm4, %v1787_v14  ;;  %v1783_v46 = vmul.f32 %v3843_v21, %v4689_v24 }
 0x983   : > { %v2239_v53 = vmax.f32 %v2223_v56, %v2231_v17  ;;  %v2225_v30 = vadd.f32 %v2221_v59, %v2108_v35  ;;  %3475 = vmatpush3.bf16.msra.mxu1 %v1921_v16 }
 0x984   : > { %v3845_v39 = vpop.eup %3844  ;;  %v2232_v40 = vmul.f32 0.2, %v2224_v23  ;;  %3515 = vmatprep.subr.bf16.mxu1 %v4612_v54  ;;  %v1788_v61 = vpack.c.bf16 %v1783_v46, %v1782_v26  ;;  %v2246_v41 = vadd.f32 %v4576_v49, %v2238_v51 }
 0x985   : > { %v3847_v25 = vpop.eup %3846  ;;  %v2233_v33 = vmul.f32 0.2, %v2225_v30  ;;  %v2111_v42 = vpop.xlane.xlu0 %2110  ;;  %v2247_v50 = vadd.f32 %v4582_v45, %v2239_v53  ;;  %v1784_v20 = vmul.f32 %v3845_v39, %v4698_v44 }
 0x986   : > { %v2240_v55 = vmax.f32 %v2224_v23, %v2232_v40  ;;  %v2226_v27 = vadd.f32 %v2221_v59, %v2111_v42  ;;  %v2114_v24 = vpop.xlane.xlu1 %2113  ;;  %3470 = vmatprep.mubr.msk.bf16.mxu1 %vm601_vm4, %v1788_v61  ;;  %v2254_v16 = vsel %vm601_vm4, %v2246_v41, -inf  ;;  %v1785_v34 = vmul.f32 %v3847_v25, %v4700_v2 }
 0x987   : > { %v2241_v32 = vmax.f32 %v2225_v30, %v2233_v33  ;;  %v2227_v22 = vadd.f32 %v2221_v59, %v2114_v24  ;;  %2255 = vmax.xlane.f32.xlu0 %v2254_v16  ;;  %v2257_v49 = vsel %vm601_vm4, %v2247_v50, -inf }
 0x988   : > { %v2234_v19 = vmul.f32 0.2, %v2226_v27  ;;  %2258 = vmax.xlane.f32.xlu1 %v2257_v49  ;;  %v1789_v31 = vpack.c.bf16 %v1785_v34, %v1784_v20  ;;  %v2248_v45 = vadd.f32 %v4593_v5, %v2240_v55 }
 0x989   : > { %v2235_v44 = vmul.f32 0.2, %v2227_v22  ;;  %v2117_v36 = vpop.xlane.xlu0 %2116  ;;  %v2249_v38 = vadd.f32 %v4597_v60, %v2241_v32 }
 0x98a   : > { %v2242_v43 = vmax.f32 %v2226_v27, %v2234_v19  ;;  %v2228_v47 = vadd.f32 %v2221_v59, %v2117_v36  ;;  %v2120_v52 = vpop.xlane.xlu1 %2119  ;;  %3471 = vmatmul.mubr.msk.bf16.gmra.mrb[16].mxu1 %vm601_vm4, %v1789_v31  ;;  %v2260_v2 = vsel %vm601_vm4, %v2248_v45, -inf }
 0x98b   : > { %v2243_v58 = vmax.f32 %v2227_v22, %v2235_v44  ;;  %v2229_v0 = vadd.f32 %v2221_v59, %v2120_v52  ;;  %2261 = vmax.xlane.f32.xlu0 %v2260_v2  ;;  %v2263_v1 = vsel %vm601_vm4, %v2249_v38, -inf }
 0x98c   : > { %v2236_v7 = vmul.f32 0.2, %v2228_v47  ;;  %2264 = vmax.xlane.f32.xlu1 %v2263_v1  ;;  %v2250_v5 = vadd.f32 %v4603_v6, %v2242_v43 }
 0x98d   : > { %v2237_v37 = vmul.f32 0.2, %v2229_v0  ;;  %v2251_v10 = vadd.f32 %v4617_v8, %v2243_v58 }
 0x98e   : > { %v2244_v60 = vmax.f32 %v2228_v47, %v2236_v7  ;;  %v2266_v29 = vsel %vm601_vm4, %v2250_v5, -inf }
 0x98f   : > { %v2245_v62 = vmax.f32 %v2229_v0, %v2237_v37  ;;  %2267 = vmax.xlane.f32.xlu0 %v2266_v29  ;;  %v2269_v13 = vsel %vm601_vm4, %v2251_v10, -inf }
 0x990   : > { %2270 = vmax.xlane.f32.xlu1 %v2269_v13  ;;  %v2252_v59 = vadd.f32 %v4628_v28, %v2244_v60 }
 0x991   : > { %v2253_v12 = vadd.f32 %v4637_v9, %v2245_v62 }
 0x992   : > { %v2272_v56 = vsel %vm601_vm4, %v2252_v59, -inf }
 0x993   : > { %2273 = vmax.xlane.f32.xlu0 %v2272_v56  ;;  %v2275_v6 = vsel %vm601_vm4, %v2253_v12, -inf }
 0x994   : > { %2276 = vmax.xlane.f32.xlu1 %v2275_v6 }
 0xa14   : > { %v2256_v15 = vpop.xlane.xlu0 %2255 }
 0xa15   : > { %v2278_v8 = vsub.f32 %v2246_v41, %v2256_v15  ;;  %v2259_v14 = vpop.xlane.xlu1 %2258 }
 0xa16   : > { %v2279_v4 = vsub.f32 %v2247_v50, %v2259_v14 }
 0xa17   : > { %v2286_v21 = vmul.f32 1.442695, %v2278_v8 }
 0xa18   : > { %v2288_v17 = vmul.f32 1.442695, %v2279_v4  ;;  %v2262_v63 = vpop.xlane.xlu0 %2261 }
 0xa19   : > { %3848 = vpow2.f32 %v2286_v21  ;;  %v2280_v26 = vsub.f32 %v2248_v45, %v2262_v63  ;;  %v2265_v51 = vpop.xlane.xlu1 %2264 }
 0xa1a   : > { %3850 = vpow2.f32 %v2288_v17  ;;  %v2281_v28 = vsub.f32 %v2249_v38, %v2265_v51 }
 0xa1b   : > { %v2290_v23 = vmul.f32 1.442695, %v2280_v26 }
 0xa1c   : > { %v2292_v9 = vmul.f32 1.442695, %v2281_v28  ;;  %v2268_v35 = vpop.xlane.xlu0 %2267 }
 0xa1d   : > { %3852 = vpow2.f32 %v2290_v23  ;;  %v2282_v46 = vsub.f32 %v2250_v5, %v2268_v35  ;;  %v2271_v53 = vpop.xlane.xlu1 %2270 }
 0xa1e   : > { %3854 = vpow2.f32 %v2292_v9  ;;  %v2283_v30 = vsub.f32 %v2251_v10, %v2271_v53 }
 0xa1f   : > { %v2294_v39 = vmul.f32 1.442695, %v2282_v46 }
 0xa20   : > { %v2296_v40 = vmul.f32 1.442695, %v2283_v30  ;;  %v2274_v61 = vpop.xlane.xlu0 %2273 }
 0xa21   : > { %3856 = vpow2.f32 %v2294_v39  ;;  %v2284_v41 = vsub.f32 %v2252_v59, %v2274_v61  ;;  %v2277_v25 = vpop.xlane.xlu1 %2276 }
 0xa22   : > { %3858 = vpow2.f32 %v2296_v40  ;;  %v2285_v33 = vsub.f32 %v2253_v12, %v2277_v25 }
 0xa23   : > { %v4758_v42 = vpop.eup %3848  ;;  %v2298_v50 = vmul.f32 1.442695, %v2284_v41 }
 0xa24   : > { %v4760_v20 = vpop.eup %3850  ;;  %v2300_v55 = vmul.f32 1.442695, %v2285_v33  ;;  %v2302_v27 = vsel %vm601_vm4, %v4758_v42, 0.0 }
 0xa25   : > { %3860 = vpow2.f32 %v2298_v50  ;;  %2303 = vadd.xlane.f32.xlu0 %v2302_v27  ;;  %v2305_v24 = vsel %vm601_vm4, %v4760_v20, 0.0 }
 0xa26   : > { %3862 = vpow2.f32 %v2300_v55  ;;  %2306 = vadd.xlane.f32.xlu1 %v2305_v24 }
 0xa27   : > { %v4766_v16 = vpop.eup %3852 }
 0xa28   : > { %v4768_v34 = vpop.eup %3854  ;;  %v2308_v32 = vsel %vm601_vm4, %v4766_v16, 0.0 }
 0xa29   : > { %2309 = vadd.xlane.f32.xlu0 %v2308_v32  ;;  %v2311_v22 = vsel %vm601_vm4, %v4768_v34, 0.0 }
 0xa2a   : > { %2312 = vadd.xlane.f32.xlu1 %v2311_v22 }
 0xa2b   : > { %v4774_v49 = vpop.eup %3856 }
 0xa2c   : > { %v4776_v19 = vpop.eup %3858  ;;  %v2314_v31 = vsel %vm601_vm4, %v4774_v49, 0.0 }
 0xa2d   : > { %2315 = vadd.xlane.f32.xlu0 %v2314_v31  ;;  %v2317_v45 = vsel %vm601_vm4, %v4776_v19, 0.0 }
 0xa2e   : > { %2318 = vadd.xlane.f32.xlu1 %v2317_v45 }
 0xa2f   : > { %v4782_v44 = vpop.eup %3860 }
 0xa30   : > { %v4784_v36 = vpop.eup %3862  ;;  %v2320_v38 = vsel %vm601_vm4, %v4782_v44, 0.0 }
 0xa31   : > { %2321 = vadd.xlane.f32.xlu0 %v2320_v38  ;;  %v2323_v43 = vsel %vm601_vm4, %v4784_v36, 0.0 }
 0xa32   : > { %2324 = vadd.xlane.f32.xlu1 %v2323_v43 }
 0xa55   : > { %v3468_v47 = vpop.f32.mrb[12].mxu1 }
 0xa56   : > { %v1881_v52 = vmin.f32 %v3468_v47, 0.0  ;;  %v1840_v2 = vpop.f32.mrb[13].mxu1  ;;  %vm1873_vm0 = vcmp.gt.f32.partialorder %v3468_v47, 0.0 }
 0xa57   : > { %v1879_v58 = vmin.f32 %v1840_v2, 0.0  ;;  %v3469_v0 = vpop.f32.mrb[14].mxu1  ;;  %vm1871_vm3 = vcmp.gt.f32.partialorder %v1840_v2, 0.0 }
 0xa58   : > { %v1891_v1 = vmul.f32 1.442695, %v1881_v52  ;;  %v1882_v7 = vmin.f32 %v3469_v0, 0.0  ;;  %v1843_v5 = vpop.f32.mrb[15].mxu1  ;;  %vm1874_vm1 = vcmp.gt.f32.partialorder %v3469_v0, 0.0 }
 0xa59   : > { %v1887_v37 = vmul.f32 1.442695, %v1879_v58  ;;  %v1880_v10 = vmin.f32 %v1843_v5, 0.0  ;;  %vm1872_vm10 = vcmp.gt.f32.partialorder %v1843_v5, 0.0 }
 0xa5a   : > { %3864 = vpow2.f32 %v1891_v1  ;;  %v1893_v60 = vmul.f32 1.442695, %v1882_v7 }
 0xa5b   : > { %3866 = vpow2.f32 %v1887_v37  ;;  %v1889_v29 = vmul.f32 1.442695, %v1880_v10 }
 0xa5c   : > { %3868 = vpow2.f32 %v1893_v60 }
 0xa5d   : > { %3870 = vpow2.f32 %v1889_v29  ;;  %v3472_v62 = vpop.f32.mrb[16].mxu1 }
 0xa5e   : > { %v1885_v13 = vmin.f32 %v3472_v62, 0.0  ;;  %v1856_v59 = vpop.f32.mrb[17].mxu1  ;;  %vm1877_vm11 = vcmp.gt.f32.partialorder %v3472_v62, 0.0 }
 0xa5f   : > { %v1883_v12 = vmin.f32 %v1856_v59, 0.0  ;;  %v3473_v56 = vpop.f32.mrb[18].mxu1  ;;  %vm1875_vm13 = vcmp.gt.f32.partialorder %v1856_v59, 0.0 }
 0xa60   : > { %v1899_v6 = vmul.f32 1.442695, %v1885_v13  ;;  %v1886_v15 = vmin.f32 %v3473_v56, 0.0  ;;  %v1859_v8 = vpop.f32.mrb[19].mxu1  ;;  %vm1878_vm12 = vcmp.gt.f32.partialorder %v3473_v56, 0.0 }
 0xa61   : > { %v1895_v14 = vmul.f32 1.442695, %v1883_v12  ;;  %v1884_v4 = vmin.f32 %v1859_v8, 0.0  ;;  %vm1876_vm14 = vcmp.gt.f32.partialorder %v1859_v8, 0.0 }
 0xa62   : > { %3872 = vpow2.f32 %v1899_v6  ;;  %v1901_v21 = vmul.f32 1.442695, %v1886_v15 }
 0xa63   : > { %3874 = vpow2.f32 %v1895_v14  ;;  %v1897_v17 = vmul.f32 1.442695, %v1884_v4 }
 0xa64   : > { %v3865_v63 = vpop.eup %3864  ;;  %3876 = vpow2.f32 %v1901_v21 }
 0xa65   : > { %v3867_v26 = vpop.eup %3866  ;;  %v3119_v51 = vadd.f32 -1.0, %v3865_v63  ;;  %3878 = vpow2.f32 %v1897_v17 }
 0xa66   : > { %v3869_v28 = vpop.eup %3868  ;;  %v3117_v23 = vadd.f32 -1.0, %v3867_v26 }
 0xa67   : > { %v3871_v9 = vpop.eup %3870  ;;  %v3120_v35 = vadd.f32 -1.0, %v3869_v28  ;;  %v1913_v53 = vsel %vm1873_vm0, %v3468_v47, %v3119_v51 }
 0xa68   : > { %v3118_v46 = vadd.f32 -1.0, %v3871_v9  ;;  %v1911_v39 = vsel %vm1871_vm3, %v1840_v2, %v3117_v23 }
 0xa69   : > { %v1914_v30 = vsel %vm1874_vm1, %v3469_v0, %v3120_v35 }
 0xa6a   : > { %v1923_v40 = vpack.c.bf16 %v1914_v30, %v1913_v53  ;;  %v1912_v61 = vsel %vm1872_vm10, %v1843_v5, %v3118_v46 }
 0xa6b   : > { %v1922_v41 = vpack.c.bf16 %v1912_v61, %v1911_v39 }
 0xa6c   : > { %v3873_v25 = vpop.eup %3872 }
 0xa6d   : > { %v3875_v33 = vpop.eup %3874  ;;  %v3123_v50 = vadd.f32 -1.0, %v3873_v25  ;;  %3476 = vmatprep.mubr.msk.bf16.mxu1 %vm443_vm2, %v1922_v41 }
 0xa6e   : > { %v3877_v55 = vpop.eup %3876  ;;  %v3121_v27 = vadd.f32 -1.0, %v3875_v33  ;;  %3477 = vmatmul.mubr.msk.bf16.vlgmr.msra.gmra.mrb[4].mxu1 %vm443_vm2, %v1923_v40 }
 0xa6f   : > { %v3879_v24 = vpop.eup %3878  ;;  %v3124_v32 = vadd.f32 -1.0, %v3877_v55  ;;  %3516 = vmatpush3.bf16.msra.mxu1 %v4612_v54  ;;  %v1917_v31 = vsel %vm1877_vm11, %v3472_v62, %v3123_v50 }
 0xa70   : > { %v3122_v22 = vadd.f32 -1.0, %v3879_v24  ;;  %3517 = vmatprep.subr.bf16.mxu1 %v4608_v48  ;;  %v1915_v38 = vsel %vm1875_vm13, %v1856_v59, %v3121_v27 }
 0xa71   : > { %v1918_v45 = vsel %vm1878_vm12, %v3473_v56, %v3124_v32 }
 0xa72   : > { %v1925_v43 = vpack.c.bf16 %v1918_v45, %v1917_v31  ;;  %v1916_v47 = vsel %vm1876_vm14, %v1859_v8, %v3122_v22 }
 0xa73   : > { %v1924_v52 = vpack.c.bf16 %v1916_v47, %v1915_v38  ;;  %3518 = vmatpush3.bf16.msra.mxu1 %v4608_v48 }
 0xa74   : > { %3519 = vmatprep.subr.bf16.mxu1 %v4648_v11 }
 0xa75   : > { %3480 = vmatprep.mubr.msk.bf16.mxu1 %vm443_vm2, %v1924_v52 }
 0xa76   : > { %3481 = vmatmul.mubr.msk.bf16.gmra.mrb[8].mxu1 %vm443_vm2, %v1925_v43 }
 0xa77   : > { %3520 = vmatpush3.bf16.msra.mxu1 %v4648_v11 }
 0xa78   : > { %3521 = vmatprep.subr.bf16.mxu1 %v4642_v3 }
 0xa7b   : > { %3522 = vmatpush3.bf16.msra.mxu1 %v4642_v3 }
 0xab2   : > { %v2304_v54 = vpop.xlane.xlu0 %2303 }
 0xab3   : > { %3880 = vrcp.f32 %v2304_v54  ;;  %v2307_v2 = vpop.xlane.xlu1 %2306 }
 0xab4   : > { %3882 = vrcp.f32 %v2307_v2 }
 0xab6   : > { %v2310_v58 = vpop.xlane.xlu0 %2309 }
 0xab7   : > { %3884 = vrcp.f32 %v2310_v58  ;;  %v2313_v0 = vpop.xlane.xlu1 %2312 }
 0xab8   : > { %3886 = vrcp.f32 %v2313_v0 }
 0xaba   : > { %v2316_v48 = vpop.xlane.xlu0 %2315 }
 0xabb   : > { %3888 = vrcp.f32 %v2316_v48  ;;  %v2319_v1 = vpop.xlane.xlu1 %2318 }
 0xabc   : > { %3890 = vrcp.f32 %v2319_v1 }
 0xabd   : > { %v3881_v7 = vpop.eup %3880 }
 0xabe   : > { %v3883_v5 = vpop.eup %3882  ;;  %v2322_v37 = vpop.xlane.xlu0 %2321  ;;  %v2334_v11 = vmul.f32 %v3881_v7, %v4758_v42 }
 0xabf   : > { %3892 = vrcp.f32 %v2322_v37  ;;  %v2325_v10 = vpop.xlane.xlu1 %2324  ;;  %v2335_v3 = vmul.f32 %v3883_v5, %v4760_v20 }
 0xac0   : > { %3894 = vrcp.f32 %v2325_v10 }
 0xac1   : > { %v3885_v60 = vpop.eup %3884  ;;  %v2342_v29 = vpack.c.bf16 %v2335_v3, %v2334_v11 }
 0xac2   : > { %v3887_v62 = vpop.eup %3886  ;;  %v2336_v13 = vmul.f32 %v3885_v60, %v4766_v16 }
 0xac3   : > { %v2337_v59 = vmul.f32 %v3887_v62, %v4768_v34  ;;  %3523 = vmatprep.mubr.msk.bf16.mxu1 %vm601_vm4, %v2342_v29 }
 0xac5   : > { %v3889_v12 = vpop.eup %3888  ;;  %v2343_v56 = vpack.c.bf16 %v2337_v59, %v2336_v13 }
 0xac6   : > { %v3891_v6 = vpop.eup %3890  ;;  %v2338_v15 = vmul.f32 %v3889_v12, %v4774_v49  ;;  %v2475_v49 = vld [vmem:[%s4931_s5 + $0x30] sm:$0xff] }
 0xac7   : > { %3524 = vmatmul.mubr.msk.bf16.vlgmr.msra.gmra.mrb[20].mxu1 %vm601_vm4, %v2343_v56  ;;  %v2339_v42 = vmul.f32 %v3891_v6, %v4776_v19  ;;  %v2476_v19 = vld [vmem:[%s4931_s5 + $0x38] sm:$0xff] }
 0xac8   : > { %v2477_v21 = vpack.c.bf16 %v2476_v19, %v2475_v49 }
 0xac9   : > { %v3893_v20 = vpop.eup %3892  ;;  %v2344_v8 = vpack.c.bf16 %v2339_v42, %v2338_v15  ;;  %v3163_v42 = vld [vmem:[%s4932_s6] ss:$0 sm:$0xff] }
 0xaca   : > { %v3895_v14 = vpop.eup %3894  ;;  %v2340_v4 = vmul.f32 %v3893_v20, %v4782_v44  ;;  %3531 = vmatprep.subr.bf16.mxu1 %v2477_v21 }
 0xacb   : > { %3527 = vmatprep.mubr.msk.bf16.mxu1 %vm601_vm4, %v2344_v8  ;;  %v2341_v16 = vmul.f32 %v3895_v14, %v4784_v36  ;;  %3532 = vmatpush3.bf16.msra.mxu1 %v2477_v21 }
 0xacd   : > { %v2345_v34 = vpack.c.bf16 %v2341_v16, %v2340_v4 }
 0xacf   : > { %3528 = vmatmul.mubr.msk.bf16.gmra.mrb[24].mxu1 %vm601_vm4, %v2345_v34 }
 0xb9a   : > { %v3525_v17 = vpop.f32.mrb[20].mxu1 }
 0xb9b   : > { %v2437_v44 = vmin.f32 %v3525_v17, 0.0  ;;  %v2396_v63 = vpop.f32.mrb[21].mxu1  ;;  %vm2429_vm15 = vcmp.gt.f32.partialorder %v3525_v17, 0.0 }
 0xb9c   : > { %v2435_v26 = vmin.f32 %v2396_v63, 0.0  ;;  %v3526_v51 = vpop.f32.mrb[22].mxu1  ;;  %vm2427_vm6 = vcmp.gt.f32.partialorder %v2396_v63, 0.0 }
 0xb9d   : > { %v2447_v36 = vmul.f32 1.442695, %v2437_v44  ;;  %v2438_v28 = vmin.f32 %v3526_v51, 0.0  ;;  %v2399_v23 = vpop.f32.mrb[23].mxu1  ;;  %vm2430_vm5 = vcmp.gt.f32.partialorder %v3526_v51, 0.0 }
 0xb9e   : > { %v2443_v9 = vmul.f32 1.442695, %v2435_v26  ;;  %v2436_v35 = vmin.f32 %v2399_v23, 0.0  ;;  %vm2428_vm7 = vcmp.gt.f32.partialorder %v2399_v23, 0.0 }
 0xb9f   : > { %3896 = vpow2.f32 %v2447_v36  ;;  %v2449_v46 = vmul.f32 1.442695, %v2438_v28 }
 0xba0   : > { %3898 = vpow2.f32 %v2443_v9  ;;  %v2445_v53 = vmul.f32 1.442695, %v2436_v35 }
 0xba1   : > { %3900 = vpow2.f32 %v2449_v46 }
 0xba2   : > { %3902 = vpow2.f32 %v2445_v53  ;;  %v3529_v30 = vpop.f32.mrb[24].mxu1  ;;  %v2568_v53 = vld [vmem:[%s4933_s7] sm:$0x1] }
 0xba3   : > { %v2441_v39 = vmin.f32 %v3529_v30, 0.0  ;;  %v2412_v40 = vpop.f32.mrb[25].mxu1  ;;  %vm2433_vm8 = vcmp.gt.f32.partialorder %v3529_v30, 0.0 }
 0xba4   : > { %v2439_v61 = vmin.f32 %v2412_v40, 0.0  ;;  %v3530_v41 = vpop.f32.mrb[26].mxu1  ;;  %vm2431_vm0 = vcmp.gt.f32.partialorder %v2412_v40, 0.0 }
 0xba5   : > { %v2455_v25 = vmul.f32 1.442695, %v2441_v39  ;;  %v2442_v33 = vmin.f32 %v3530_v41, 0.0  ;;  %v2415_v50 = vpop.f32.mrb[27].mxu1  ;;  %vm2434_vm9 = vcmp.gt.f32.partialorder %v3530_v41, 0.0 }
 0xba6   : > { %v2451_v55 = vmul.f32 1.442695, %v2439_v61  ;;  %v2440_v27 = vmin.f32 %v2415_v50, 0.0  ;;  %vm2432_vm1 = vcmp.gt.f32.partialorder %v2415_v50, 0.0 }
 0xba7   : > { %3904 = vpow2.f32 %v2455_v25  ;;  %v2457_v24 = vmul.f32 1.442695, %v2442_v33 }
 0xba8   : > { %3906 = vpow2.f32 %v2451_v55  ;;  %v2453_v32 = vmul.f32 1.442695, %v2440_v27 }
 0xba9   : > { %v3897_v22 = vpop.eup %3896  ;;  %3908 = vpow2.f32 %v2457_v24 }
 0xbaa   : > { %v3899_v31 = vpop.eup %3898  ;;  %v3153_v45 = vadd.f32 -1.0, %v3897_v22  ;;  %3910 = vpow2.f32 %v2453_v32 }
 0xbab   : > { %v3901_v38 = vpop.eup %3900  ;;  %v3151_v43 = vadd.f32 -1.0, %v3899_v31 }
 0xbac   : > { %v3903_v47 = vpop.eup %3902  ;;  %v3154_v52 = vadd.f32 -1.0, %v3901_v38  ;;  %v2469_v2 = vsel %vm2429_vm15, %v3525_v17, %v3153_v45 }
 0xbad   : > { %v3152_v54 = vadd.f32 -1.0, %v3903_v47  ;;  %v2467_v0 = vsel %vm2427_vm6, %v2396_v63, %v3151_v43 }
 0xbae   : > { %v2470_v58 = vsel %vm2430_vm5, %v3526_v51, %v3154_v52 }
 0xbaf   : > { %v2479_v48 = vpack.c.bf16 %v2470_v58, %v2469_v2  ;;  %v2468_v1 = vsel %vm2428_vm7, %v2399_v23, %v3152_v54 }
 0xbb0   : > { %v2478_v7 = vpack.c.bf16 %v2468_v1, %v2467_v0 }
 0xbb1   : > { %v3905_v5 = vpop.eup %3904 }
 0xbb2   : > { %v3907_v37 = vpop.eup %3906  ;;  %v3157_v11 = vadd.f32 -1.0, %v3905_v5  ;;  %3533 = vmatprep.mubr.msk.bf16.mxu1 %vm443_vm2, %v2478_v7 }
 0xbb3   : > { %v3909_v10 = vpop.eup %3908  ;;  %v3155_v3 = vadd.f32 -1.0, %v3907_v37  ;;  %3534 = vmatmul.mubr.msk.bf16.vlgmr.msra.gmra.mrb[4].mxu1 %vm443_vm2, %v2479_v48  ;;  %v3968_v37 = vld [vmem:[%s4223_s23] sm:$0xff] }
 0xbb4   : > { %v3911_v60 = vpop.eup %3910  ;;  %v3158_v29 = vadd.f32 -1.0, %v3909_v10  ;;  %v2473_v13 = vsel %vm2433_vm8, %v3529_v30, %v3157_v11  ;;  %v3969_v10 = vld [vmem:[%s4223_s23 + $0x8] sm:$0xff] }
 0xbb5   : > { %v3156_v62 = vadd.f32 -1.0, %v3911_v60  ;;  %v2471_v12 = vsel %vm2431_vm0, %v2412_v40, %v3155_v3 }
 0xbb6   : > { %v2474_v59 = vsel %vm2434_vm9, %v3530_v41, %v3158_v29 }
 0xbb7   : > { %v2481_v56 = vpack.c.bf16 %v2474_v59, %v2473_v13  ;;  %v2472_v6 = vsel %vm2432_vm1, %v2415_v50, %v3156_v62 }
 0xbb8   : > { %v2480_v15 = vpack.c.bf16 %v2472_v6, %v2471_v12 }
 0xbba   : > { %3537 = vmatprep.mubr.msk.bf16.mxu1 %vm443_vm2, %v2480_v15  ;;  %v3971_v15 = vld [vmem:[%s4223_s23 + $0x18] sm:$0xff] }
 0xbbb   : > { %3538 = vmatmul.mubr.msk.bf16.gmra.mrb[8].mxu1 %vm443_vm2, %v2481_v56  ;;  %v3970_v56 = vld [vmem:[%s4223_s23 + $0x10] sm:$0xff] }
 0xc86   : > { %v3535_v20 = vpop.f32.mrb[4].mxu1 }
 0xc87   : > { %v2528_v8 = vpop.f32.mrb[5].mxu1  ;;  %v2577_v21 = vmul.f32 %v3535_v20, %v3163_v42 }
 0xc88   : > { %v3536_v14 = vpop.f32.mrb[6].mxu1  ;;  %v2575_v4 = vmul.f32 %v3163_v42, %v2528_v8 }
 0xc89   : > { %v3644_v16 = vpack.c.bf16 %v3536_v14, %v3535_v20  ;;  %v2531_v34 = vpop.f32.mrb[7].mxu1  ;;  %v2578_v44 = vmul.f32 %v3536_v14, %v3163_v42  ;;  %v3972_v20 = vld [vmem:[%s4223_s23 + $0x20] sm:$0xff] }
 0xc8a   : > { %v3641_v49 = vpack.c.bf16 %v2531_v34, %v2528_v8  ;;  %2583 = vadd.xlane.f32.xlu0 %v2575_v4  ;;  %v2576_v19 = vmul.f32 %v3163_v42, %v2531_v34  ;;  %v3973_v34 = vld [vmem:[%s4223_s23 + $0x28] sm:$0xff] }
 0xc8c   : > { %3642 = vmatpush3.bf16.xpose.msra.mxu0 %v3641_v49  ;;  %3560 = vmatprep.subr.bf16.mxu1 %v3641_v49 }
 0xc8d   : > { %2585 = vadd.xlane.f32.xlu1 %v2576_v19  ;;  %3561 = vmatpush3.bf16.msra.mxu1 %v3641_v49 }
 0xc8e   : > { %2587 = vadd.xlane.f32.xlu0 %v2577_v21  ;;  %v3539_v17 = vpop.f32.mrb[8].mxu1  ;;  %3562 = vmatprep.subr.bf16.mxu1 %v3644_v16 }
 0xc8f   : > { %v2544_v63 = vpop.f32.mrb[9].mxu1  ;;  %3643 = vmatprep.subr.bf16.mxu0 %v4040_v18  ;;  %v2581_v35 = vmul.f32 %v3539_v17, %v3163_v42 }
 0xc90   : > { %v2579_v26 = vmul.f32 %v3163_v42, %v2544_v63  ;;  %v3540_v51 = vpop.f32.mrb[10].mxu1 }
 0xc91   : > { %2589 = vadd.xlane.f32.xlu1 %v2578_v44  ;;  %v3650_v36 = vpack.c.bf16 %v3540_v51, %v3539_v17  ;;  %v2547_v28 = vpop.f32.mrb[11].mxu1  ;;  %3563 = vmatpush3.bf16.msra.mxu1 %v3644_v16  ;;  %v2582_v46 = vmul.f32 %v3540_v51, %v3163_v42  ;;  %v3974_v44 = vld [vmem:[%s4223_s23 + $0x30] sm:$0xff] }
 0xc92   : > { %v2580_v23 = vmul.f32 %v3163_v42, %v2547_v28  ;;  %v3647_v9 = vpack.c.bf16 %v2547_v28, %v2544_v63  ;;  %2591 = vadd.xlane.f32.xlu0 %v2579_v26  ;;  %v3975_v26 = vld [vmem:[%s4223_s23 + $0x38] sm:$0xff]  ;;  %s311_s23 = sand.u32 1, %s4030_s28  }
 0xc93   : > { %s3026_s19 = sshll.u32 %s311_s23, 6  ;;  %s4885_s26 = scalar_lea.sflag [#allocation3], %s311_s23 }
 0xc94   : > { %3645 = vmatpush3.bf16.xpose.msra.mxu0 %v3644_v16  ;;  %3564 = vmatprep.subr.bf16.mxu1 %v3647_v9  ;;  %s4864_s20 = scalar_lea.vmem [#allocation2], %s3026_s19 }
 0xc95   : > { %2593 = vadd.xlane.f32.xlu1 %v2580_v23  ;;  %3565 = vmatpush3.bf16.msra.mxu1 %v3647_v9  ;;  %s2948_s22 = sshll.u32 %s4864_s20, 4  ;;  %s4878_s22 = int_to_ptr.vmem [resolvable:$true] %s2948_s22 }
 0xc96   : > { %2595 = vadd.xlane.f32.xlu0 %v2581_v35  ;;  %3566 = vmatprep.subr.bf16.mxu1 %v3650_v36  ;;  %s3976_s10 = scalar_lea.vmem %s4878_s22, 1024  ;;  %p3983_p0 = scmp.lt.s32.totalorder %s4878_s22, %s3981_s13 }
 0xc97   : > { %3646 = vmatprep.subr.bf16.mxu0 %v4040_v18  ;;  %p3977_p11 = scmp.ne.s32.totalorder %s4878_s22, %s3976_s10  ;;  %p3984_p1 = scmp.lt.s32.totalorder %s3982_s17, %s3976_s10 }
 0xc99   : > { %2597 = vadd.xlane.f32.xlu1 %v2582_v46  ;;  %3567 = vmatpush3.bf16.msra.mxu1 %v3650_v36  ;;  %p3978_p12 = pnand %p3977_p11, %p4129_p5  ;;  %p3985_p2 = por %p3984_p1, %p3983_p0 }
 0xc9b   : > { %p3979_p13 = pneg %p3978_p12 }
 0xc9c   : > { %3648 = vmatpush3.bf16.xpose.msra.mxu0 %v3647_v9 }
 0xc9d   : > { %3649 = vmatprep.subr.bf16.mxu0 %v4040_v18  ;;  %p3986_p3 = pnand %p3985_p2, %p3979_p13 }
 0xca4   : > { %3651 = vmatpush3.bf16.xpose.msra.mxu0 %v3650_v36 }
 0xcab   : > { %3558 = vmatmul.mubr.f32.vlgmr.msra.gmra.mrb[52].mxu0 %v2568_v53 }
 0xd17   : > { %v2584_v30 = vpop.xlane.xlu0 %2583 }
 0xd1a   : > { %v2586_v39 = vpop.xlane.xlu1 %2585 }
 0xd1b   : > { %v2588_v40 = vpop.xlane.xlu0 %2587 }
 0xd1e   : > { %v2590_v61 = vpop.xlane.xlu1 %2589 }
 0xd1f   : > { %v2592_v41 = vpop.xlane.xlu0 %2591 }
 0xd22   : > { %v2594_v25 = vpop.xlane.xlu1 %2593 }
 0xd23   : > { %v2596_v22 = vpop.xlane.xlu0 %2595 }
 0xd26   : > { %v2598_v38 = vpop.xlane.xlu1 %2597 }
 0xd7e   : > { %v2665_v33 = vpop.f32.mrb[52].mxu0 }
 0xd7f   : > { %v2672_v50 = vrot.slane %v2665_v33, %v4215_v57  ;;  %v3559_v55 = vpop.f32.mrb[53].mxu0 }
 0xd81   : > { %v2673_v27 = vadd.f32 %v2672_v50, %v2584_v30  ;;  %v2674_v24 = vadd.f32 %v2672_v50, %v2586_v39  ;;  %v2675_v32 = vadd.f32 %v2672_v50, %v2588_v40  ;;  %v2676_v18 = vadd.f32 %v2672_v50, %v2590_v61 }
 0xd82   : > { %v2677_v31 = vadd.f32 %v2672_v50, %v2592_v41  ;;  %v2678_v45 = vadd.f32 %v2672_v50, %v2594_v25  ;;  %v2679_v54 = vadd.f32 %v2672_v50, %v2596_v22  ;;  %v2680_v57 = vadd.f32 %v2672_v50, %v2598_v38 }
 0xd83   : > { %v2681_v43 = vmul.f32 0.2, %v2673_v27  ;;  %v2682_v47 = vmul.f32 0.2, %v2674_v24  ;;  %v2683_v52 = vmul.f32 0.2, %v2675_v32 }
 0xd84   : > { %v2684_v2 = vmul.f32 0.2, %v2676_v18  ;;  %v2685_v58 = vmul.f32 0.2, %v2677_v31  ;;  %v2686_v0 = vmul.f32 0.2, %v2678_v45 }
 0xd85   : > { %v2689_v48 = vmax.f32 %v2673_v27, %v2681_v43  ;;  %v2690_v1 = vmax.f32 %v2674_v24, %v2682_v47  ;;  %v2691_v7 = vmax.f32 %v2675_v32, %v2683_v52  ;;  %v2687_v62 = vmul.f32 0.2, %v2679_v54 }
 0xd86   : > { %v2692_v5 = vmax.f32 %v2676_v18, %v2684_v2  ;;  %v2693_v60 = vmax.f32 %v2677_v31, %v2685_v58  ;;  %v2694_v29 = vmax.f32 %v2678_v45, %v2686_v0  ;;  %v2688_v13 = vmul.f32 0.2, %v2680_v57 }
 0xd87   : > { %v2697_v11 = vadd.f32 %v3968_v37, %v2689_v48  ;;  %v2698_v3 = vadd.f32 %v3969_v10, %v2690_v1  ;;  %v2699_v6 = vadd.f32 %v3970_v56, %v2691_v7  ;;  %v2695_v14 = vmax.f32 %v2679_v54, %v2687_v62 }
 0xd88   : > { %v2700_v42 = vadd.f32 %v3971_v15, %v2692_v5  ;;  %v2701_v8 = vadd.f32 %v3972_v20, %v2693_v60  ;;  %v2702_v49 = vadd.f32 %v3973_v34, %v2694_v29  ;;  %v2696_v19 = vmax.f32 %v2680_v57, %v2688_v13 }
 0xd89   : > { %v2705_v59 = vsel %vm601_vm4, %v2697_v11, -inf  ;;  %v2708_v12 = vsel %vm601_vm4, %v2698_v3, -inf  ;;  %v2711_v4 = vsel %vm601_vm4, %v2699_v6, -inf  ;;  %v2703_v63 = vadd.f32 %v3974_v44, %v2695_v14 }
 0xd8a   : > { %2706 = vmax.xlane.f32.xlu0 %v2705_v59  ;;  %2709 = vmax.xlane.f32.xlu1 %v2708_v12  ;;  %v2714_v16 = vsel %vm601_vm4, %v2700_v42, -inf  ;;  %v2717_v21 = vsel %vm601_vm4, %v2701_v8, -inf  ;;  %v2720_v17 = vsel %vm601_vm4, %v2702_v49, -inf  ;;  %v2704_v51 = vadd.f32 %v3975_v26, %v2696_v19 }
 0xd8b   : > { %v2723_v36 = vsel %vm601_vm4, %v2703_v63, -inf }
 0xd8c   : > { %v2726_v28 = vsel %vm601_vm4, %v2704_v51, -inf }
 0xd8e   : > { %2712 = vmax.xlane.f32.xlu0 %v2711_v4  ;;  %2715 = vmax.xlane.f32.xlu1 %v2714_v16 }
 0xd92   : > { %2718 = vmax.xlane.f32.xlu0 %v2717_v21  ;;  %2721 = vmax.xlane.f32.xlu1 %v2720_v17 }
 0xd96   : > { %2724 = vmax.xlane.f32.xlu0 %v2723_v36  ;;  %2727 = vmax.xlane.f32.xlu1 %v2726_v28 }
 0xe17   : > { %v2707_v23 = vpop.xlane.xlu0 %2706  ;;  %v2710_v9 = vpop.xlane.xlu1 %2709 }
 0xe18   : > { %v2729_v35 = vsub.f32 %v2697_v11, %v2707_v23  ;;  %v2730_v46 = vsub.f32 %v2698_v3, %v2710_v9 }
 0xe1a   : > { %v2737_v53 = vmul.f32 1.442695, %v2729_v35  ;;  %v2739_v30 = vmul.f32 1.442695, %v2730_v46 }
 0xe1b   : > { %v2713_v39 = vpop.xlane.xlu0 %2712  ;;  %v2716_v40 = vpop.xlane.xlu1 %2715 }
 0xe1c   : > { %3912 = vpow2.f32 %v2737_v53  ;;  %v2731_v61 = vsub.f32 %v2699_v6, %v2713_v39  ;;  %v2732_v41 = vsub.f32 %v2700_v42, %v2716_v40 }
 0xe1d   : > { %3914 = vpow2.f32 %v2739_v30 }
 0xe1e   : > { %v2741_v25 = vmul.f32 1.442695, %v2731_v61  ;;  %v2743_v33 = vmul.f32 1.442695, %v2732_v41 }
 0xe1f   : > { %v2719_v50 = vpop.xlane.xlu0 %2718  ;;  %v2722_v55 = vpop.xlane.xlu1 %2721 }
 0xe20   : > { %3916 = vpow2.f32 %v2741_v25  ;;  %v2733_v27 = vsub.f32 %v2701_v8, %v2719_v50  ;;  %v2734_v24 = vsub.f32 %v2702_v49, %v2722_v55 }
 0xe21   : > { %3918 = vpow2.f32 %v2743_v33 }
 0xe22   : > { %v2745_v32 = vmul.f32 1.442695, %v2733_v27  ;;  %v2747_v18 = vmul.f32 1.442695, %v2734_v24 }
 0xe23   : > { %v2725_v22 = vpop.xlane.xlu0 %2724  ;;  %v2728_v31 = vpop.xlane.xlu1 %2727 }
 0xe24   : > { %3920 = vpow2.f32 %v2745_v32  ;;  %v2735_v45 = vsub.f32 %v2703_v63, %v2725_v22  ;;  %v2736_v38 = vsub.f32 %v2704_v51, %v2728_v31 }
 0xe25   : > { %3922 = vpow2.f32 %v2747_v18 }
 0xe26   : > { %v3913_v43 = vpop.eup %3912  ;;  %v2749_v47 = vmul.f32 1.442695, %v2735_v45  ;;  %v2751_v52 = vmul.f32 1.442695, %v2736_v38 }
 0xe27   : > { %v3915_v54 = vpop.eup %3914  ;;  %v2753_v2 = vsel %vm601_vm4, %v3913_v43, 0.0 }
 0xe28   : > { %3924 = vpow2.f32 %v2749_v47  ;;  %2754 = vadd.xlane.f32.xlu0 %v2753_v2  ;;  %v2756_v58 = vsel %vm601_vm4, %v3915_v54, 0.0 }
 0xe29   : > { %3926 = vpow2.f32 %v2751_v52  ;;  %2757 = vadd.xlane.f32.xlu1 %v2756_v58 }
 0xe2a   : > { %v3917_v0 = vpop.eup %3916 }
 0xe2b   : > { %v3919_v57 = vpop.eup %3918  ;;  %v2759_v48 = vsel %vm601_vm4, %v3917_v0, 0.0 }
 0xe2c   : > { %2760 = vadd.xlane.f32.xlu0 %v2759_v48  ;;  %v2762_v1 = vsel %vm601_vm4, %v3919_v57, 0.0 }
 0xe2d   : > { %2763 = vadd.xlane.f32.xlu1 %v2762_v1 }
 0xe2e   : > { %v3921_v7 = vpop.eup %3920 }
 0xe2f   : > { %v3923_v5 = vpop.eup %3922  ;;  %v2765_v37 = vsel %vm601_vm4, %v3921_v7, 0.0 }
 0xe30   : > { %2766 = vadd.xlane.f32.xlu0 %v2765_v37  ;;  %v2768_v11 = vsel %vm601_vm4, %v3923_v5, 0.0 }
 0xe31   : > { %2769 = vadd.xlane.f32.xlu1 %v2768_v11 }
 0xe32   : > { %v3925_v10 = vpop.eup %3924 }
 0xe33   : > { %v3927_v3 = vpop.eup %3926  ;;  %v2771_v60 = vsel %vm601_vm4, %v3925_v10, 0.0 }
 0xe34   : > { %2772 = vadd.xlane.f32.xlu0 %v2771_v60  ;;  %v2774_v29 = vsel %vm601_vm4, %v3927_v3, 0.0 }
 0xe35   : > { %2775 = vadd.xlane.f32.xlu1 %v2774_v29 }
 0xeb5   : > { %v2755_v62 = vpop.xlane.xlu0 %2754 }
 0xeb6   : > { %3928 = vrcp.f32 %v2755_v62  ;;  %v2758_v13 = vpop.xlane.xlu1 %2757 }
 0xeb7   : > { %3930 = vrcp.f32 %v2758_v13 }
 0xeb9   : > { %v2761_v59 = vpop.xlane.xlu0 %2760 }
 0xeba   : > { %3932 = vrcp.f32 %v2761_v59  ;;  %v2764_v12 = vpop.xlane.xlu1 %2763 }
 0xebb   : > { %3934 = vrcp.f32 %v2764_v12 }
 0xebd   : > { %v2767_v56 = vpop.xlane.xlu0 %2766 }
 0xebe   : > { %3936 = vrcp.f32 %v2767_v56  ;;  %v2770_v6 = vpop.xlane.xlu1 %2769 }
 0xebf   : > { %3938 = vrcp.f32 %v2770_v6 }
 0xec0   : > { %v3929_v15 = vpop.eup %3928 }
 0xec1   : > { %v3931_v42 = vpop.eup %3930  ;;  %v2773_v20 = vpop.xlane.xlu0 %2772  ;;  %v2785_v8 = vmul.f32 %v3929_v15, %v3913_v43 }
 0xec2   : > { %3940 = vrcp.f32 %v2773_v20  ;;  %v2776_v14 = vpop.xlane.xlu1 %2775  ;;  %v2786_v4 = vmul.f32 %v3931_v42, %v3915_v54 }
 0xec3   : > { %3942 = vrcp.f32 %v2776_v14 }
 0xec4   : > { %v3933_v16 = vpop.eup %3932  ;;  %v2793_v34 = vpack.c.bf16 %v2786_v4, %v2785_v8 }
 0xec5   : > { %v3935_v49 = vpop.eup %3934  ;;  %v2787_v19 = vmul.f32 %v3933_v16, %v3917_v0 }
 0xec6   : > { %v2788_v21 = vmul.f32 %v3935_v49, %v3919_v57  ;;  %3568 = vmatprep.mubr.msk.bf16.mxu1 %vm601_vm4, %v2793_v34 }
 0xec8   : > { %v3937_v17 = vpop.eup %3936  ;;  %v2794_v44 = vpack.c.bf16 %v2788_v21, %v2787_v19 }
 0xec9   : > { %v3939_v63 = vpop.eup %3938  ;;  %v2789_v26 = vmul.f32 %v3937_v17, %v3921_v7 }
 0xeca   : > { %3569 = vmatmul.mubr.msk.bf16.vlgmr.msra.gmra.mrb[28].mxu1 %vm601_vm4, %v2794_v44  ;;  %v2790_v51 = vmul.f32 %v3939_v63, %v3923_v5 }
 0xecc   : > { %v3941_v36 = vpop.eup %3940  ;;  %v2795_v28 = vpack.c.bf16 %v2790_v51, %v2789_v26 }
 0xecd   : > { %v3943_v23 = vpop.eup %3942  ;;  %v2791_v9 = vmul.f32 %v3941_v36, %v3925_v10 }
 0xece   : > { %3572 = vmatprep.mubr.msk.bf16.mxu1 %vm601_vm4, %v2795_v28  ;;  %v2792_v35 = vmul.f32 %v3943_v23, %v3927_v3 }
 0xed0   : > { %v2796_v46 = vpack.c.bf16 %v2792_v35, %v2791_v9 }
 0xed2   : > { %3573 = vmatmul.mubr.msk.bf16.gmra.mrb[32].mxu1 %vm601_vm4, %v2796_v46 }
 0xf9d   : > { %v3570_v53 = vpop.f32.mrb[28].mxu1 }
 0xf9e   : > { %v2888_v30 = vmin.f32 %v3570_v53, 0.0  ;;  %v2847_v39 = vpop.f32.mrb[29].mxu1  ;;  %vm2880_vm2 = vcmp.gt.f32.partialorder %v3570_v53, 0.0 }
 0xf9f   : > { %v2886_v40 = vmin.f32 %v2847_v39, 0.0  ;;  %v3571_v61 = vpop.f32.mrb[30].mxu1  ;;  %vm2878_vm4 = vcmp.gt.f32.partialorder %v2847_v39, 0.0 }
 0xfa0   : > { %v2898_v41 = vmul.f32 1.442695, %v2888_v30  ;;  %v2889_v25 = vmin.f32 %v3571_v61, 0.0  ;;  %v2850_v33 = vpop.f32.mrb[31].mxu1  ;;  %vm2881_vm3 = vcmp.gt.f32.partialorder %v3571_v61, 0.0 }
 0xfa1   : > { %v2894_v50 = vmul.f32 1.442695, %v2886_v40  ;;  %v2887_v55 = vmin.f32 %v2850_v33, 0.0  ;;  %vm2879_vm10 = vcmp.gt.f32.partialorder %v2850_v33, 0.0 }
 0xfa2   : > { %3944 = vpow2.f32 %v2898_v41  ;;  %v2900_v27 = vmul.f32 1.442695, %v2889_v25 }
 0xfa3   : > { %3946 = vpow2.f32 %v2894_v50  ;;  %v2896_v24 = vmul.f32 1.442695, %v2887_v55 }
 0xfa4   : > { %3948 = vpow2.f32 %v2900_v27 }
 0xfa5   : > { %3950 = vpow2.f32 %v2896_v24  ;;  %v3574_v32 = vpop.f32.mrb[32].mxu1 }
 0xfa6   : > { %v2892_v18 = vmin.f32 %v3574_v32, 0.0  ;;  %v2863_v22 = vpop.f32.mrb[33].mxu1  ;;  %vm2884_vm11 = vcmp.gt.f32.partialorder %v3574_v32, 0.0 }
 0xfa7   : > { %v2890_v31 = vmin.f32 %v2863_v22, 0.0  ;;  %v3575_v45 = vpop.f32.mrb[34].mxu1  ;;  %vm2882_vm12 = vcmp.gt.f32.partialorder %v2863_v22, 0.0 }
 0xfa8   : > { %v2906_v38 = vmul.f32 1.442695, %v2892_v18  ;;  %v2893_v43 = vmin.f32 %v3575_v45, 0.0  ;;  %v2866_v47 = vpop.f32.mrb[35].mxu1  ;;  %vm2885_vm13 = vcmp.gt.f32.partialorder %v3575_v45, 0.0 }
 0xfa9   : > { %v2902_v52 = vmul.f32 1.442695, %v2890_v31  ;;  %v2891_v54 = vmin.f32 %v2866_v47, 0.0  ;;  %vm2883_vm14 = vcmp.gt.f32.partialorder %v2866_v47, 0.0 }
 0xfaa   : > { %3952 = vpow2.f32 %v2906_v38  ;;  %v2908_v2 = vmul.f32 1.442695, %v2893_v43 }
 0xfab   : > { %3954 = vpow2.f32 %v2902_v52  ;;  %v2904_v58 = vmul.f32 1.442695, %v2891_v54 }
 0xfac   : > { %v3945_v0 = vpop.eup %3944  ;;  %3956 = vpow2.f32 %v2908_v2 }
 0xfad   : > { %v3947_v57 = vpop.eup %3946  ;;  %v3170_v48 = vadd.f32 -1.0, %v3945_v0  ;;  %3958 = vpow2.f32 %v2904_v58 }
 0xfae   : > { %v3949_v1 = vpop.eup %3948  ;;  %v3168_v7 = vadd.f32 -1.0, %v3947_v57 }
 0xfaf   : > { %v3951_v5 = vpop.eup %3950  ;;  %v2920_v37 = vsel %vm2880_vm2, %v3570_v53, %v3170_v48  ;;  %v3171_v11 = vadd.f32 -1.0, %v3949_v1 }
 0xfb0   : > { %2928 = vst [vmem:[%s4864_s20 + $0x10] sm:$0xff] %v2920_v37  ;;  %v2918_v10 = vsel %vm2878_vm4, %v2847_v39, %v3168_v7  ;;  %v3169_v3 = vadd.f32 -1.0, %v3951_v5 }
 0xfb1   : > { %2926 = vst [vmem:[%s4864_s20] sm:$0xff] %v2918_v10  ;;  %v2921_v60 = vsel %vm2881_vm3, %v3571_v61, %v3171_v11 }
 0xfb2   : > { %2929 = vst [vmem:[%s4864_s20 + $0x18] sm:$0xff] %v2921_v60  ;;  %v2919_v29 = vsel %vm2879_vm10, %v2850_v33, %v3169_v3 }
 0xfb3   : > { %2927 = vst [vmem:[%s4864_s20 + $0x8] sm:$0xff] %v2919_v29 }
 0xfb4   : > { %v3953_v62 = vpop.eup %3952 }
 0xfb5   : > { %v3955_v13 = vpop.eup %3954  ;;  %v3174_v59 = vadd.f32 -1.0, %v3953_v62 }
 0xfb6   : > { %v3957_v12 = vpop.eup %3956  ;;  %v3172_v56 = vadd.f32 -1.0, %v3955_v13 }
 0xfb7   : > { %v3959_v6 = vpop.eup %3958  ;;  %v2924_v15 = vsel %vm2884_vm11, %v3574_v32, %v3174_v59  ;;  %v3175_v42 = vadd.f32 -1.0, %v3957_v12 }
 0xfb8   : > { %2932 = vst [vmem:[%s4864_s20 + $0x30] sm:$0xff] %v2924_v15  ;;  %v2922_v20 = vsel %vm2882_vm12, %v2863_v22, %v3172_v56  ;;  %v3173_v8 = vadd.f32 -1.0, %v3959_v6 }
 0xfb9   : > { %2930 = vst [vmem:[%s4864_s20 + $0x20] sm:$0xff] %v2922_v20  ;;  %v2925_v14 = vsel %vm2885_vm13, %v3575_v45, %v3175_v42 }
 0xfba   : > { %2933 = vst [vmem:[%s4864_s20 + $0x38] sm:$0xff] %v2925_v14  ;;  %v2923_v4 = vsel %vm2883_vm14, %v2866_v47, %v3173_v8 }
 0xfbb   : > { %2931 = vst [vmem:[%s4864_s20 + $0x28] sm:$0xff] %v2923_v4 }
 0xfbc   : > { %3989 = shalt.err (!%p3986_p3)
}
 0xfbd   : > { %s3990_s18 = scalar_lea.hbm %s4876_s9, 1024  ;;  %s3994_s20 = scalar_lea.hbm %s4934_s8, 8192 }
 0xfbe   : > { %p3991_p4 = scmp.ne.s32.totalorder %s4876_s9, %s3990_s18  ;;  %p3995_p9 = scmp.lt.u32.totalorder %s4876_s9, %s4934_s8 }
 0xfbf   : > { %p3996_p10 = scmp.lt.u32.totalorder %s3994_s20, %s3990_s18  ;;  %p3998_p12 = scmp.lt.u32.totalorder %s3990_s18, %s4876_s9 }
 0xfc0   : > { %p3992_p7 = pnand %p3991_p4, %p4129_p5 }
 0xfc1   : > { %p3997_p11 = por %p3996_p10, %p3995_p9 }
 0xfc2   : > { %p3993_p8 = pneg %p3992_p7 }
 0xfc3   : > { %p3999_p13 = por %p3998_p12, %p3997_p11 }
 0xfc5   : > { %p4000_p0 = pnand %p3999_p13, %p3993_p8 }
 0xfc7   : > { %4003 = shalt.err (!%p4000_p0)
}
 0xfc8   : > { %s4044_s25 = smov 128   ;;  %s4045_s10 = smov 8  }
 0xfc9   : > { %3676 = dma.vmem_to_hbm [thread:$0]  (%p4129_p5), %s4878_s22, 1024, %s4876_s9, %s4885_s26, %s4044_s25, %s4044_s25, %s4045_s10  }
 0xfca PF: > { %p3682_p1 = scmp.ge.s32.totalorder %s4038_s30, 2  ;;  %s2963_s12 = sand.u32 1, %s4026_s27  }
 0xfcb   : > { %s2964_s13 = scalar_lea.sflag [#allocation3], %s2963_s12 }
 0xfcc   : > { %p3679_p2 = pnand %p3682_p1, %p4133_p6 }
 0xfce   : > { %4021 = dma.done.wait (!%p3679_p2), %s2964_s13, 1024  }
 0xfcf   : > { %4023 = vsyncadd (!%p3679_p2), %s2964_s13, 4294966272  ;;  %p18_p3 = scmp.ge.s32.totalorder %s4116_s11, 10   ;;  %s4939_s27 = smov %s4030_s28 }
 0xfd0   : > { %s4940_s28 = smov %s4034_s29  ;;  %s4941_s29 = smov %s4127_s14 }
 0xfd1   : > { %s4942_s30 = smov %s4116_s11  ;;  %20 = sbr.rel (!%p18_p3) target bundleno = 3 (0x3), region = 93 }
 0xfd8   :  { %2969 = vsyncpa [#allocation3], 1 }
 0xfd9   :  { %2971 = vsyncpa [#allocation3 + $0x1], 1 }

</bundles_post_ra>
